<compile_context>
chip_gen: v7x
topology: tpu7x:2x2x1
jax: 0.10.0
libtpu: 0.0.40
codegen_flags: <defaults>
</compile_context>

<pallas_src>
import numpy as np
import jax
import jax.numpy as jnp
from jax.experimental import pallas as pl
from jax.experimental.pallas import tpu as pltpu


# --------------------------- fused transformer-stack kernel ------------------

def _clip_encoder_kernel(x_ref, ln1g_ref, ln1b_ref, wq_ref, bq_ref, wk_ref,
                         bk_ref, wv_ref, bv_ref, wo_ref, bo_ref, ln2g_ref,
                         ln2b_ref, wfc_ref, bfc_ref, wpr_ref, bpr_ref,
                         o_ref, act_ref):
    layer = pl.program_id(1)
    n_layers = pl.num_programs(1)
    Bt, L, D = x_ref.shape
    H = wq_ref.shape[0]
    hd = wq_ref.shape[2]
    M = Bt * L

    # Load the batch tile into the f32 VMEM carry on the first layer only.
    @pl.when(layer == 0)
    def _():
        act_ref[...] = x_ref[...].reshape(M, D).astype(jnp.float32)

    x = act_ref[...]                                   # (M, D) f32

    def layer_norm(v, g_ref, b_ref):
        mu = jnp.mean(v, axis=-1, keepdims=True)
        var = jnp.mean(jnp.square(v - mu), axis=-1, keepdims=True)
        return (v - mu) * jax.lax.rsqrt(var + 1e-5) * g_ref[...] + b_ref[...]

    # Causal mask built in-kernel, shared across sequences and heads.
    row = jax.lax.broadcasted_iota(jnp.int32, (L, L), 0)
    col = jax.lax.broadcasted_iota(jnp.int32, (L, L), 1)
    causal = (col <= row)[None, :, :]                  # (1, L, L)

    # ---- attention sub-block: LN1 -> per-head QKV/attn/out-proj -> residual --
    h = layer_norm(x, ln1g_ref, ln1b_ref).astype(jnp.bfloat16)   # (M, D)
    attn = jnp.zeros((M, D), jnp.float32)
    for hh in range(H):            # static unroll; weight slices via ref indexing
        # softmax scale is pre-folded into wq/bq on the host.
        q = (jnp.dot(h, wq_ref[hh], preferred_element_type=jnp.float32)
             + bq_ref[hh]).reshape(Bt, L, hd)
        k = (jnp.dot(h, wk_ref[hh], preferred_element_type=jnp.float32)
             + bk_ref[hh]).reshape(Bt, L, hd)
        v = (jnp.dot(h, wv_ref[hh], preferred_element_type=jnp.float32)
             + bv_ref[hh]).reshape(Bt, L, hd)
        s = jnp.einsum('bqd,bkd->bqk', q.astype(jnp.bfloat16),
                       k.astype(jnp.bfloat16),
                       preferred_element_type=jnp.float32)        # (Bt, L, L) f32
        s = jnp.where(causal, s, -1e30)
        p = jnp.exp(s - jnp.max(s, axis=-1, keepdims=True))
        p = p * pl.reciprocal(jnp.sum(p, axis=-1, keepdims=True), approx=True)
        pv = jnp.einsum('bqk,bkd->bqd', p.astype(jnp.bfloat16),
                        v.astype(jnp.bfloat16),
                        preferred_element_type=jnp.float32)       # (Bt, L, hd)
        # accumulate this head's out-projection directly (no concatenate)
        attn = attn + jnp.dot(pv.reshape(M, hd).astype(jnp.bfloat16), wo_ref[hh],
                              preferred_element_type=jnp.float32)
    x = x + attn + bo_ref[...]                         # residual add in VMEM

    # ---- MLP sub-block: LN2 -> fc + QuickGELU -> proj -> residual ------------
    h2 = layer_norm(x, ln2g_ref, ln2b_ref).astype(jnp.bfloat16)
    y = jnp.dot(h2, wfc_ref[...], preferred_element_type=jnp.float32) + bfc_ref[...]
    y = y * jax.nn.sigmoid(1.702 * y)                  # CLIP QuickGELU
    z = jnp.dot(y.astype(jnp.bfloat16), wpr_ref[...],
                preferred_element_type=jnp.float32) + bpr_ref[...]
    x = x + z

    act_ref[...] = x                                   # carry to next layer

    @pl.when(layer == n_layers - 1)
    def _():
        o_ref[...] = x.reshape(Bt, L, D).astype(o_ref.dtype)


_PARAM_ORDER = ("ln1_g", "ln1_b", "wq", "bq", "wk", "bk", "wv", "bv",
                "wo", "bo", "ln2_g", "ln2_b", "wfc", "bfc", "wpr", "bpr")


def transformer_stack(x, enc):
    """All transformer layers in a single pallas_call."""
    B, L, D = x.shape
    n_layers = enc["wq"].shape[0]
    n_bt = 2 if (B % 2 == 0 and B >= 2) else 1     # >=2 batch tiles -> v7x megacore
    Bt = B // n_bt

    def wspec(arr):
        nd = arr.ndim
        # leading `layer` dim squeezed; block index only depends on the layer axis
        return pl.BlockSpec((None,) + arr.shape[1:],
                            lambda b, l: (l,) + (0,) * (nd - 1))

    weights = [enc[k] for k in _PARAM_ORDER]
    return pl.pallas_call(
        _clip_encoder_kernel,
        out_shape=jax.ShapeDtypeStruct((B, L, D), jnp.float32),
        grid=(n_bt, n_layers),
        in_specs=[pl.BlockSpec((Bt, L, D), lambda b, l: (b, 0, 0))]
                 + [wspec(a) for a in weights],
        out_specs=pl.BlockSpec((Bt, L, D), lambda b, l: (b, 0, 0)),
        scratch_shapes=[pltpu.VMEM((Bt * L, D), jnp.float32)],
        compiler_params=pltpu.CompilerParams(
            dimension_semantics=("parallel", "arbitrary"),
            vmem_limit_bytes=32 * 1024 * 1024),
    )(x, *weights)


# --------------------------- tiny tail ops (plain jnp) ------------------------

def gcn_forward(x, p):
    # GraphConv: adj_norm @ (x @ W + b), two layers with ReLU in between.
    # TODO(synk): exact GCN layer config comes from config.hidden_layers string
    # (not given); using a fixed 2-layer GCN with embed_dim hidden width.
    h = p["adj"] @ (x @ p["w1"] + p["b1"])
    h = jnp.maximum(h, 0.0)
    return p["adj"] @ (h @ p["w2"] + p["b2"])


def clip_text_encoder_forward(text, params, enc):
    B, L = text.shape
    eot_idx = jnp.argmax(text, axis=-1)                            # (B,)
    x = params["token_embedding"][text].astype(jnp.float32)        # (B, L, D)
    x = x + params["positional_embedding"][None, :, :]
    x = transformer_stack(x, enc)                                  # ONE pallas_call

    # LAdapter: GCN refinement of EOT embeddings, added back.
    # TODO(synk): exact position of LAdapter inside Transformer.resblocks is
    # config-dependent; it is applied here after the attention blocks.
    eot_emb = x[jnp.arange(B), eot_idx]                            # (B, D)
    pooled = eot_emb + gcn_forward(eot_emb, params["gcn"])

    # ln_final + EOT pooling + text projection: only the pooled EOT rows feed
    # the module output, so LN is applied to those rows (identical result).
    mu = jnp.mean(pooled, axis=-1, keepdims=True)
    var = jnp.mean(jnp.square(pooled - mu), axis=-1, keepdims=True)
    pooled = (pooled - mu) * jax.lax.rsqrt(var + 1e-5)
    pooled = pooled * params["ln_final_g"] + params["ln_final_b"]
    return pooled @ params["text_projection"]                      # (B, E)


# --------------------------- parameter init & host-side prep -----------------

def build_adjacency(num_attrs, num_objs, pairs):
    # mirrors LAdapter.adj_from_pairs (dense instead of scipy CSR)
    num_words = num_attrs + num_objs
    n = num_words + len(pairs)
    A = np.zeros((n, n), np.float32)
    for i in range(num_words):
        A[i, i] += 1.0
    for idx, (a, o) in enumerate(pairs):
        ai, oi = a, num_attrs + o
        A[ai, oi] += 1.0
        A[oi, ai] += 1.0
        nid = num_words + idx
        A[nid, nid] += 1.0
        A[nid, ai] += 1.0
        A[nid, oi] += 1.0
        A[ai, nid] += 1.0
        A[oi, nid] += 1.0
    A = A / A.sum(axis=1, keepdims=True)     # row-normalised (D^-1 A)
    return A


def init_params(key, *, vocab, L, D, heads, layers, E, num_attrs, num_objs, pairs):
    ks = jax.random.split(key, 4 + layers)
    attn_std = D ** -0.5
    proj_std = (D ** -0.5) * ((2 * layers) ** -0.5)
    fc_std = (2 * D) ** -0.5

    params = {
        "token_embedding": jax.random.normal(ks[0], (vocab, D), jnp.float32),
        "positional_embedding": 0.01 * jax.random.normal(ks[1], (L, D), jnp.float32),
        "text_projection": attn_std * jax.random.normal(ks[2], (D, E), jnp.float32),
        "ln_final_g": jnp.ones((D,), jnp.float32),
        "ln_final_b": jnp.zeros((D,), jnp.float32),
    }
    blocks = []
    for l in range(layers):
        bk = jax.random.split(ks[3 + l], 4)
        blocks.append({
            "ln1_g": jnp.ones((D,), jnp.float32), "ln1_b": jnp.zeros((D,), jnp.float32),
            "ln2_g": jnp.ones((D,), jnp.float32), "ln2_b": jnp.zeros((D,), jnp.float32),
            "in_w": attn_std * jax.random.normal(bk[0], (D, 3 * D), jnp.float32),
            "in_b": jnp.zeros((3 * D,), jnp.float32),
            "out_w": proj_std * jax.random.normal(bk[1], (D, D), jnp.float32),
            "out_b": jnp.zeros((D,), jnp.float32),
            "fc_w": fc_std * jax.random.normal(bk[2], (D, 4 * D), jnp.float32),
            "fc_b": jnp.zeros((4 * D,), jnp.float32),
            "proj_w": proj_std * jax.random.normal(bk[3], (4 * D, D), jnp.float32),
            "proj_b": jnp.zeros((D,), jnp.float32),
        })
    params["blocks"] = blocks

    gk = jax.random.split(ks[3 + layers - 1], 3)[1:]
    params["gcn"] = {
        "adj": jnp.asarray(build_adjacency(num_attrs, num_objs, pairs)),
        "w1": attn_std * jax.random.normal(gk[0], (D, D), jnp.float32),
        "b1": jnp.zeros((D,), jnp.float32),
        "w2": attn_std * jax.random.normal(gk[1], (D, D), jnp.float32),
        "b2": jnp.zeros((D,), jnp.float32),
    }
    return params


def prepare_encoder_params(blocks, heads):
    """Host-side (outside jit): stack layers, split heads, fold the softmax
    scale into the Q projection, cast matmul weights to bf16."""
    D = blocks[0]["ln1_g"].shape[0]
    assert D % heads == 0, "text_heads must divide text_width"
    hd = D // heads
    scale = hd ** -0.5

    def stack(fn, dtype=None):
        a = jnp.stack([fn(b) for b in blocks])
        return a.astype(dtype) if dtype is not None else a

    def head_w(w):                     # (D, D) -> (H, D, hd)
        return jnp.transpose(w.reshape(D, heads, hd), (1, 0, 2))

    def head_b(b):                     # (D,) -> (H, 1, hd)
        return b.reshape(heads, 1, hd)

    return {
        "ln1_g": stack(lambda b: b["ln1_g"].reshape(1, D)),
        "ln1_b": stack(lambda b: b["ln1_b"].reshape(1, D)),
        "wq": stack(lambda b: head_w(b["in_w"][:, :D]) * scale, jnp.bfloat16),
        "bq": stack(lambda b: head_b(b["in_b"][:D]) * scale),
        "wk": stack(lambda b: head_w(b["in_w"][:, D:2 * D]), jnp.bfloat16),
        "bk": stack(lambda b: head_b(b["in_b"][D:2 * D])),
        "wv": stack(lambda b: head_w(b["in_w"][:, 2 * D:]), jnp.bfloat16),
        "bv": stack(lambda b: head_b(b["in_b"][2 * D:])),
        "wo": stack(lambda b: b["out_w"].reshape(heads, hd, D), jnp.bfloat16),
        "bo": stack(lambda b: b["out_b"].reshape(1, D)),
        "ln2_g": stack(lambda b: b["ln2_g"].reshape(1, D)),
        "ln2_b": stack(lambda b: b["ln2_b"].reshape(1, D)),
        "wfc": stack(lambda b: b["fc_w"], jnp.bfloat16),
        "bfc": stack(lambda b: b["fc_b"].reshape(1, 4 * D)),
        "wpr": stack(lambda b: b["proj_w"], jnp.bfloat16),
        "bpr": stack(lambda b: b["proj_b"].reshape(1, D)),
    }


# --------------------------- main ---------------------------------------------

if __name__ == "__main__":
    # synthetic CompositionDataset: 2 attrs, 2 objs, all 4 (attr, obj) pairs
    num_attrs, num_objs = 2, 2
    pairs = [(a, o) for a in range(num_attrs) for o in range(num_objs)]
    num_nodes = num_attrs + num_objs + len(pairs)      # 8 -> transformer batch

    context_length, vocab_size = 8, 64
    text_width, text_heads, text_layers, text_embed_dim = 32, 4, 2, 16

    key = jax.random.PRNGKey(0)
    pkey, tkey = jax.random.split(key)
    params = init_params(pkey, vocab=vocab_size, L=context_length, D=text_width,
                         heads=text_heads, layers=text_layers, E=text_embed_dim,
                         num_attrs=num_attrs, num_objs=num_objs, pairs=pairs)
    enc = prepare_encoder_params(params["blocks"], text_heads)

    # token ids; EOT token = vocab_size - 1 so argmax(text, -1) finds its position
    text = jax.random.randint(tkey, (num_nodes, context_length), 1, vocab_size - 2)
    eot_pos = jnp.asarray(np.array([7, 5, 6, 4, 7, 3, 5, 6], np.int32))
    text = text.at[jnp.arange(num_nodes), eot_pos].set(vocab_size - 1).astype(jnp.int32)

    fwd = jax.jit(lambda t: clip_text_encoder_forward(t, params, enc))
    out = fwd(text)
    jax.block_until_ready(out)
    assert out.shape == (num_nodes, text_embed_dim)
    assert bool(jnp.all(jnp.isfinite(out)))
    print("KERNEL_OK")
</pallas_src>

<mosaic_0001>
module attributes {stable_mosaic.version = 11 : i64} {
  func.func @_clip_encoder_kernel(%arg0: i32, %arg1: i32, %arg2: memref<4x8x32xf32, #tpu.memory_space<vmem>>, %arg3: memref<1x1x32xf32, #tpu.memory_space<vmem>>, %arg4: memref<1x1x32xf32, #tpu.memory_space<vmem>>, %arg5: memref<1x4x32x8xbf16, #tpu.memory_space<vmem>>, %arg6: memref<1x4x1x8xf32, #tpu.memory_space<vmem>>, %arg7: memref<1x4x32x8xbf16, #tpu.memory_space<vmem>>, %arg8: memref<1x4x1x8xf32, #tpu.memory_space<vmem>>, %arg9: memref<1x4x32x8xbf16, #tpu.memory_space<vmem>>, %arg10: memref<1x4x1x8xf32, #tpu.memory_space<vmem>>, %arg11: memref<1x4x8x32xbf16, #tpu.memory_space<vmem>>, %arg12: memref<1x1x32xf32, #tpu.memory_space<vmem>>, %arg13: memref<1x1x32xf32, #tpu.memory_space<vmem>>, %arg14: memref<1x1x32xf32, #tpu.memory_space<vmem>>, %arg15: memref<1x32x128xbf16, #tpu.memory_space<vmem>>, %arg16: memref<1x1x128xf32, #tpu.memory_space<vmem>>, %arg17: memref<1x128x32xbf16, #tpu.memory_space<vmem>>, %arg18: memref<1x1x32xf32, #tpu.memory_space<vmem>>, %arg19: memref<4x8x32xf32, #tpu.memory_space<vmem>>, %arg20: memref<32x32xf32, #tpu.memory_space<vmem>>) attributes {dimension_semantics = [#tpu.dimension_semantics<parallel>, #tpu.dimension_semantics<arbitrary>], iteration_bounds = array<i64: 2, 2>, scalar_prefetch = 0 : i64, scratch_operands = 1 : i64, tpu.core_type = #tpu.core_type<tc>, window_params = [{transform_indices = @transform_0, window_bounds = array<i64: 4, 8, 32>}, {transform_indices = @transform_1, window_bounds = array<i64: 1, 1, 32>}, {transform_indices = @transform_2, window_bounds = array<i64: 1, 1, 32>}, {transform_indices = @transform_3, window_bounds = array<i64: 1, 4, 32, 8>}, {transform_indices = @transform_4, window_bounds = array<i64: 1, 4, 1, 8>}, {transform_indices = @transform_5, window_bounds = array<i64: 1, 4, 32, 8>}, {transform_indices = @transform_6, window_bounds = array<i64: 1, 4, 1, 8>}, {transform_indices = @transform_7, window_bounds = array<i64: 1, 4, 32, 8>}, {transform_indices = @transform_8, window_bounds = array<i64: 1, 4, 1, 8>}, {transform_indices = @transform_9, window_bounds = array<i64: 1, 4, 8, 32>}, {transform_indices = @transform_10, window_bounds = array<i64: 1, 1, 32>}, {transform_indices = @transform_11, window_bounds = array<i64: 1, 1, 32>}, {transform_indices = @transform_12, window_bounds = array<i64: 1, 1, 32>}, {transform_indices = @transform_13, window_bounds = array<i64: 1, 32, 128>}, {transform_indices = @transform_14, window_bounds = array<i64: 1, 1, 128>}, {transform_indices = @transform_15, window_bounds = array<i64: 1, 128, 32>}, {transform_indices = @transform_16, window_bounds = array<i64: 1, 1, 32>}, {transform_indices = @transform_17, window_bounds = array<i64: 4, 8, 32>}]} {
    %c0_i32 = arith.constant 0 : i32
    %0 = arith.cmpi eq, %arg1, %c0_i32 : i32
    %1 = arith.extui %0 : i1 to i32
    %c0_i32_0 = arith.constant 0 : i32
    %2 = arith.cmpi ne, %1, %c0_i32_0 : i32
    scf.if %2 {
      %c0_191 = arith.constant 0 : index
      %c0_192 = arith.constant 0 : index
      %c0_193 = arith.constant 0 : index
      %296 = vector.load %arg2[%c0_191, %c0_192, %c0_193] : memref<4x8x32xf32, #tpu.memory_space<vmem>>, vector<4x8x32xf32>
      %297 = vector.shape_cast %296 : vector<4x8x32xf32> to vector<32x32xf32>
      %c0_194 = arith.constant 0 : index
      %c0_195 = arith.constant 0 : index
      %298 = vector.load %arg20[%c0_194, %c0_195] : memref<32x32xf32, #tpu.memory_space<vmem>>, vector<32x32xf32>
      tpu.vector_store %arg20[%c0_194, %c0_195], %297 {strides = array<i32>} : memref<32x32xf32, #tpu.memory_space<vmem>>, vector<32x32xf32>,
    } else {
    }
    %c0 = arith.constant 0 : index
    %c0_1 = arith.constant 0 : index
    %3 = vector.load %arg20[%c0, %c0_1] : memref<32x32xf32, #tpu.memory_space<vmem>>, vector<32x32xf32>
    %4 = tpu.iota {dimensions = array<i32: 0>} : vector<8x8xi32>
    %5 = tpu.iota {dimensions = array<i32: 1>} : vector<8x8xi32>
    %6 = arith.cmpi sle, %5, %4 : vector<8x8xi32>
    %7 = vector.shape_cast %6 : vector<8x8xi1> to vector<1x8x8xi1>
    %cst = arith.constant dense<0.000000e+00> : vector<32xf32>
    %8 = vector.multi_reduction <add>, %3, %cst [1] : vector<32x32xf32> to vector<32xf32>
    %9 = vector.shape_cast %8 : vector<32xf32> to vector<32x1xf32>
    %cst_2 = arith.constant 3.200000e+01 : f32
    %10 = vector.broadcast %cst_2 : f32 to vector<32x1xf32>
    %11 = arith.divf %9, %10 : vector<32x1xf32>
    %12 = vector.broadcast %11 : vector<32x1xf32> to vector<32x32xf32>
    %13 = arith.subf %3, %12 : vector<32x32xf32>
    %14 = arith.mulf %13, %13 : vector<32x32xf32>
    %cst_3 = arith.constant dense<0.000000e+00> : vector<32xf32>
    %15 = vector.multi_reduction <add>, %14, %cst_3 [1] : vector<32x32xf32> to vector<32xf32>
    %16 = vector.shape_cast %15 : vector<32xf32> to vector<32x1xf32>
    %cst_4 = arith.constant 3.200000e+01 : f32
    %17 = vector.broadcast %cst_4 : f32 to vector<32x1xf32>
    %18 = arith.divf %16, %17 : vector<32x1xf32>
    %19 = vector.broadcast %11 : vector<32x1xf32> to vector<32x32xf32>
    %20 = arith.subf %3, %19 : vector<32x32xf32>
    %cst_5 = arith.constant 9.99999974E-6 : f32
    %21 = vector.broadcast %cst_5 : f32 to vector<32x1xf32>
    %22 = arith.addf %18, %21 : vector<32x1xf32>
    %23 = math.rsqrt %22 : vector<32x1xf32>
    %24 = vector.broadcast %23 : vector<32x1xf32> to vector<32x32xf32>
    %25 = arith.mulf %20, %24 : vector<32x32xf32>
    %c0_6 = arith.constant 0 : index
    %c0_7 = arith.constant 0 : index
    %c0_8 = arith.constant 0 : index
    %26 = vector.load %arg3[%c0_6, %c0_7, %c0_8] : memref<1x1x32xf32, #tpu.memory_space<vmem>>, vector<1x1x32xf32>
    %27 = vector.shape_cast %26 : vector<1x1x32xf32> to vector<1x32xf32>
    %28 = vector.broadcast %27 : vector<1x32xf32> to vector<32x32xf32>
    %29 = arith.mulf %25, %28 : vector<32x32xf32>
    %c0_9 = arith.constant 0 : index
    %c0_10 = arith.constant 0 : index
    %c0_11 = arith.constant 0 : index
    %30 = vector.load %arg4[%c0_9, %c0_10, %c0_11] : memref<1x1x32xf32, #tpu.memory_space<vmem>>, vector<1x1x32xf32>
    %31 = vector.shape_cast %30 : vector<1x1x32xf32> to vector<1x32xf32>
    %32 = vector.broadcast %31 : vector<1x32xf32> to vector<32x32xf32>
    %33 = arith.addf %29, %32 : vector<32x32xf32>
    %34 = arith.truncf %33 : vector<32x32xf32> to vector<32x32xbf16>
    %cst_12 = arith.constant 0.000000e+00 : f32
    %35 = vector.broadcast %cst_12 : f32 to vector<32x32xf32>
    %c0_13 = arith.constant 0 : index
    %c0_14 = arith.constant 0 : index
    %c0_15 = arith.constant 0 : index
    %c0_16 = arith.constant 0 : index
    %36 = vector.load %arg5[%c0_13, %c0_14, %c0_15, %c0_16] : memref<1x4x32x8xbf16, #tpu.memory_space<vmem>>, vector<1x1x32x8xbf16>
    %37 = vector.shape_cast %36 : vector<1x1x32x8xbf16> to vector<32x8xbf16>
    %cst_17 = arith.constant dense<0.000000e+00> : vector<32x8xf32>
    %38 = tpu.matmul %34, %37, %cst_17 {dimension_numbers = #tpu.dot_dimension_numbers<[1], [0], [0], [1], [0, 0, 1, 1], [], []>} : vector<32x32xbf16>, vector<32x8xbf16>, vector<32x8xf32> -> vector<32x8xf32>
    %c0_18 = arith.constant 0 : index
    %c0_19 = arith.constant 0 : index
    %c0_20 = arith.constant 0 : index
    %c0_21 = arith.constant 0 : index
    %39 = vector.load %arg6[%c0_18, %c0_19, %c0_20, %c0_21] : memref<1x4x1x8xf32, #tpu.memory_space<vmem>>, vector<1x1x1x8xf32>
    %40 = vector.shape_cast %39 : vector<1x1x1x8xf32> to vector<1x8xf32>
    %41 = vector.broadcast %40 : vector<1x8xf32> to vector<32x8xf32>
    %42 = arith.addf %38, %41 : vector<32x8xf32>
    %43 = vector.shape_cast %42 : vector<32x8xf32> to vector<4x8x8xf32>
    %c0_22 = arith.constant 0 : index
    %c0_23 = arith.constant 0 : index
    %c0_24 = arith.constant 0 : index
    %c0_25 = arith.constant 0 : index
    %44 = vector.load %arg7[%c0_22, %c0_23, %c0_24, %c0_25] : memref<1x4x32x8xbf16, #tpu.memory_space<vmem>>, vector<1x1x32x8xbf16>
    %45 = vector.shape_cast %44 : vector<1x1x32x8xbf16> to vector<32x8xbf16>
    %cst_26 = arith.constant dense<0.000000e+00> : vector<32x8xf32>
    %46 = tpu.matmul %34, %45, %cst_26 {dimension_numbers = #tpu.dot_dimension_numbers<[1], [0], [0], [1], [0, 0, 1, 1], [], []>} : vector<32x32xbf16>, vector<32x8xbf16>, vector<32x8xf32> -> vector<32x8xf32>
    %c0_27 = arith.constant 0 : index
    %c0_28 = arith.constant 0 : index
    %c0_29 = arith.constant 0 : index
    %c0_30 = arith.constant 0 : index
    %47 = vector.load %arg8[%c0_27, %c0_28, %c0_29, %c0_30] : memref<1x4x1x8xf32, #tpu.memory_space<vmem>>, vector<1x1x1x8xf32>
    %48 = vector.shape_cast %47 : vector<1x1x1x8xf32> to vector<1x8xf32>
    %49 = vector.broadcast %48 : vector<1x8xf32> to vector<32x8xf32>
    %50 = arith.addf %46, %49 : vector<32x8xf32>
    %51 = vector.shape_cast %50 : vector<32x8xf32> to vector<4x8x8xf32>
    %c0_31 = arith.constant 0 : index
    %c0_32 = arith.constant 0 : index
    %c0_33 = arith.constant 0 : index
    %c0_34 = arith.constant 0 : index
    %52 = vector.load %arg9[%c0_31, %c0_32, %c0_33, %c0_34] : memref<1x4x32x8xbf16, #tpu.memory_space<vmem>>, vector<1x1x32x8xbf16>
    %53 = vector.shape_cast %52 : vector<1x1x32x8xbf16> to vector<32x8xbf16>
    %cst_35 = arith.constant dense<0.000000e+00> : vector<32x8xf32>
    %54 = tpu.matmul %34, %53, %cst_35 {dimension_numbers = #tpu.dot_dimension_numbers<[1], [0], [0], [1], [0, 0, 1, 1], [], []>} : vector<32x32xbf16>, vector<32x8xbf16>, vector<32x8xf32> -> vector<32x8xf32>
    %c0_36 = arith.constant 0 : index
    %c0_37 = arith.constant 0 : index
    %c0_38 = arith.constant 0 : index
    %c0_39 = arith.constant 0 : index
    %55 = vector.load %arg10[%c0_36, %c0_37, %c0_38, %c0_39] : memref<1x4x1x8xf32, #tpu.memory_space<vmem>>, vector<1x1x1x8xf32>
    %56 = vector.shape_cast %55 : vector<1x1x1x8xf32> to vector<1x8xf32>
    %57 = vector.broadcast %56 : vector<1x8xf32> to vector<32x8xf32>
    %58 = arith.addf %54, %57 : vector<32x8xf32>
    %59 = vector.shape_cast %58 : vector<32x8xf32> to vector<4x8x8xf32>
    %60 = arith.truncf %43 : vector<4x8x8xf32> to vector<4x8x8xbf16>
    %61 = arith.truncf %51 : vector<4x8x8xf32> to vector<4x8x8xbf16>
    "tpu.trace_start"() <{level = 10 : i32, message = "bqd,bkd->bqk"}> : () -> ()
    %cst_40 = arith.constant dense<0.000000e+00> : vector<4x8x8xf32>
    %62 = tpu.matmul %60, %61, %cst_40 {dimension_numbers = #tpu.dot_dimension_numbers<[2], [2], [1], [1], [0, 0, 0, 1, 1, 1], [0], [0]>} : vector<4x8x8xbf16>, vector<4x8x8xbf16>, vector<4x8x8xf32> -> vector<4x8x8xf32>
    %cst_41 = arith.constant -1.000000e+30 : f32
    "tpu.trace_stop"() : () -> ()
    %63 = vector.shape_cast %7 : vector<1x8x8xi1> to vector<1x8x8xi1>
    %64 = vector.broadcast %63 : vector<1x8x8xi1> to vector<4x8x8xi1>
    %65 = vector.broadcast %cst_41 : f32 to vector<4x8x8xf32>
    %66 = arith.select %64, %62, %65 : vector<4x8x8xi1>, vector<4x8x8xf32>
    %cst_42 = arith.constant dense<0xFF800000> : vector<4x8xf32>
    %67 = vector.multi_reduction <maximumf>, %66, %cst_42 [2] : vector<4x8x8xf32> to vector<4x8xf32>
    %68 = vector.shape_cast %67 : vector<4x8xf32> to vector<4x8x1xf32>
    %69 = vector.broadcast %68 : vector<4x8x1xf32> to vector<4x8x8xf32>
    %70 = arith.subf %66, %69 : vector<4x8x8xf32>
    %71 = math.exp %70 : vector<4x8x8xf32>
    %cst_43 = arith.constant dense<0.000000e+00> : vector<4x8xf32>
    %72 = vector.multi_reduction <add>, %71, %cst_43 [2] : vector<4x8x8xf32> to vector<4x8xf32>
    %73 = vector.shape_cast %72 : vector<4x8xf32> to vector<4x8x1xf32>
    %74 = tpu.reciprocal %73 {approx = true} : vector<4x8x1xf32> -> vector<4x8x1xf32>
    %75 = vector.broadcast %74 : vector<4x8x1xf32> to vector<4x8x8xf32>
    %76 = arith.mulf %71, %75 : vector<4x8x8xf32>
    %77 = arith.truncf %76 : vector<4x8x8xf32> to vector<4x8x8xbf16>
    %78 = arith.truncf %59 : vector<4x8x8xf32> to vector<4x8x8xbf16>
    "tpu.trace_start"() <{level = 10 : i32, message = "bqk,bkd->bqd"}> : () -> ()
    %cst_44 = arith.constant dense<0.000000e+00> : vector<4x8x8xf32>
    %79 = tpu.matmul %77, %78, %cst_44 {dimension_numbers = #tpu.dot_dimension_numbers<[2], [1], [1], [2], [0, 0, 0, 1, 1, 2], [0], [0]>} : vector<4x8x8xbf16>, vector<4x8x8xbf16>, vector<4x8x8xf32> -> vector<4x8x8xf32>
    "tpu.trace_stop"() : () -> ()
    %80 = vector.shape_cast %79 : vector<4x8x8xf32> to vector<32x8xf32>
    %81 = arith.truncf %80 : vector<32x8xf32> to vector<32x8xbf16>
    %c0_45 = arith.constant 0 : index
    %c0_46 = arith.constant 0 : index
    %c0_47 = arith.constant 0 : index
    %c0_48 = arith.constant 0 : index
    %82 = vector.load %arg11[%c0_45, %c0_46, %c0_47, %c0_48] : memref<1x4x8x32xbf16, #tpu.memory_space<vmem>>, vector<1x1x8x32xbf16>
    %83 = vector.shape_cast %82 : vector<1x1x8x32xbf16> to vector<8x32xbf16>
    %cst_49 = arith.constant dense<0.000000e+00> : vector<32x32xf32>
    %84 = tpu.matmul %81, %83, %cst_49 {dimension_numbers = #tpu.dot_dimension_numbers<[1], [0], [0], [1], [0, 0, 1, 1], [], []>} : vector<32x8xbf16>, vector<8x32xbf16>, vector<32x32xf32> -> vector<32x32xf32>
    %85 = arith.addf %35, %84 : vector<32x32xf32>
    %c0_50 = arith.constant 0 : index
    %c1 = arith.constant 1 : index
    %c0_51 = arith.constant 0 : index
    %c0_52 = arith.constant 0 : index
    %86 = vector.load %arg5[%c0_50, %c1, %c0_51, %c0_52] : memref<1x4x32x8xbf16, #tpu.memory_space<vmem>>, vector<1x1x32x8xbf16>
    %87 = vector.shape_cast %86 : vector<1x1x32x8xbf16> to vector<32x8xbf16>
    %cst_53 = arith.constant dense<0.000000e+00> : vector<32x8xf32>
    %88 = tpu.matmul %34, %87, %cst_53 {dimension_numbers = #tpu.dot_dimension_numbers<[1], [0], [0], [1], [0, 0, 1, 1], [], []>} : vector<32x32xbf16>, vector<32x8xbf16>, vector<32x8xf32> -> vector<32x8xf32>
    %c0_54 = arith.constant 0 : index
    %c1_55 = arith.constant 1 : index
    %c0_56 = arith.constant 0 : index
    %c0_57 = arith.constant 0 : index
    %89 = vector.load %arg6[%c0_54, %c1_55, %c0_56, %c0_57] : memref<1x4x1x8xf32, #tpu.memory_space<vmem>>, vector<1x1x1x8xf32>
    %90 = vector.shape_cast %89 : vector<1x1x1x8xf32> to vector<1x8xf32>
    %91 = vector.broadcast %90 : vector<1x8xf32> to vector<32x8xf32>
    %92 = arith.addf %88, %91 : vector<32x8xf32>
    %93 = vector.shape_cast %92 : vector<32x8xf32> to vector<4x8x8xf32>
    %c0_58 = arith.constant 0 : index
    %c1_59 = arith.constant 1 : index
    %c0_60 = arith.constant 0 : index
    %c0_61 = arith.constant 0 : index
    %94 = vector.load %arg7[%c0_58, %c1_59, %c0_60, %c0_61] : memref<1x4x32x8xbf16, #tpu.memory_space<vmem>>, vector<1x1x32x8xbf16>
    %95 = vector.shape_cast %94 : vector<1x1x32x8xbf16> to vector<32x8xbf16>
    %cst_62 = arith.constant dense<0.000000e+00> : vector<32x8xf32>
    %96 = tpu.matmul %34, %95, %cst_62 {dimension_numbers = #tpu.dot_dimension_numbers<[1], [0], [0], [1], [0, 0, 1, 1], [], []>} : vector<32x32xbf16>, vector<32x8xbf16>, vector<32x8xf32> -> vector<32x8xf32>
    %c0_63 = arith.constant 0 : index
    %c1_64 = arith.constant 1 : index
    %c0_65 = arith.constant 0 : index
    %c0_66 = arith.constant 0 : index
    %97 = vector.load %arg8[%c0_63, %c1_64, %c0_65, %c0_66] : memref<1x4x1x8xf32, #tpu.memory_space<vmem>>, vector<1x1x1x8xf32>
    %98 = vector.shape_cast %97 : vector<1x1x1x8xf32> to vector<1x8xf32>
    %99 = vector.broadcast %98 : vector<1x8xf32> to vector<32x8xf32>
    %100 = arith.addf %96, %99 : vector<32x8xf32>
    %101 = vector.shape_cast %100 : vector<32x8xf32> to vector<4x8x8xf32>
    %c0_67 = arith.constant 0 : index
    %c1_68 = arith.constant 1 : index
    %c0_69 = arith.constant 0 : index
    %c0_70 = arith.constant 0 : index
    %102 = vector.load %arg9[%c0_67, %c1_68, %c0_69, %c0_70] : memref<1x4x32x8xbf16, #tpu.memory_space<vmem>>, vector<1x1x32x8xbf16>
    %103 = vector.shape_cast %102 : vector<1x1x32x8xbf16> to vector<32x8xbf16>
    %cst_71 = arith.constant dense<0.000000e+00> : vector<32x8xf32>
    %104 = tpu.matmul %34, %103, %cst_71 {dimension_numbers = #tpu.dot_dimension_numbers<[1], [0], [0], [1], [0, 0, 1, 1], [], []>} : vector<32x32xbf16>, vector<32x8xbf16>, vector<32x8xf32> -> vector<32x8xf32>
    %c0_72 = arith.constant 0 : index
    %c1_73 = arith.constant 1 : index
    %c0_74 = arith.constant 0 : index
    %c0_75 = arith.constant 0 : index
    %105 = vector.load %arg10[%c0_72, %c1_73, %c0_74, %c0_75] : memref<1x4x1x8xf32, #tpu.memory_space<vmem>>, vector<1x1x1x8xf32>
    %106 = vector.shape_cast %105 : vector<1x1x1x8xf32> to vector<1x8xf32>
    %107 = vector.broadcast %106 : vector<1x8xf32> to vector<32x8xf32>
    %108 = arith.addf %104, %107 : vector<32x8xf32>
    %109 = vector.shape_cast %108 : vector<32x8xf32> to vector<4x8x8xf32>
    %110 = arith.truncf %93 : vector<4x8x8xf32> to vector<4x8x8xbf16>
    %111 = arith.truncf %101 : vector<4x8x8xf32> to vector<4x8x8xbf16>
    "tpu.trace_start"() <{level = 10 : i32, message = "bqd,bkd->bqk"}> : () -> ()
    %cst_76 = arith.constant dense<0.000000e+00> : vector<4x8x8xf32>
    %112 = tpu.matmul %110, %111, %cst_76 {dimension_numbers = #tpu.dot_dimension_numbers<[2], [2], [1], [1], [0, 0, 0, 1, 1, 1], [0], [0]>} : vector<4x8x8xbf16>, vector<4x8x8xbf16>, vector<4x8x8xf32> -> vector<4x8x8xf32>
    %cst_77 = arith.constant -1.000000e+30 : f32
    "tpu.trace_stop"() : () -> ()
    %113 = vector.shape_cast %7 : vector<1x8x8xi1> to vector<1x8x8xi1>
    %114 = vector.broadcast %113 : vector<1x8x8xi1> to vector<4x8x8xi1>
    %115 = vector.broadcast %cst_77 : f32 to vector<4x8x8xf32>
    %116 = arith.select %114, %112, %115 : vector<4x8x8xi1>, vector<4x8x8xf32>
    %cst_78 = arith.constant dense<0xFF800000> : vector<4x8xf32>
    %117 = vector.multi_reduction <maximumf>, %116, %cst_78 [2] : vector<4x8x8xf32> to vector<4x8xf32>
    %118 = vector.shape_cast %117 : vector<4x8xf32> to vector<4x8x1xf32>
    %119 = vector.broadcast %118 : vector<4x8x1xf32> to vector<4x8x8xf32>
    %120 = arith.subf %116, %119 : vector<4x8x8xf32>
    %121 = math.exp %120 : vector<4x8x8xf32>
    %cst_79 = arith.constant dense<0.000000e+00> : vector<4x8xf32>
    %122 = vector.multi_reduction <add>, %121, %cst_79 [2] : vector<4x8x8xf32> to vector<4x8xf32>
    %123 = vector.shape_cast %122 : vector<4x8xf32> to vector<4x8x1xf32>
    %124 = tpu.reciprocal %123 {approx = true} : vector<4x8x1xf32> -> vector<4x8x1xf32>
    %125 = vector.broadcast %124 : vector<4x8x1xf32> to vector<4x8x8xf32>
    %126 = arith.mulf %121, %125 : vector<4x8x8xf32>
    %127 = arith.truncf %126 : vector<4x8x8xf32> to vector<4x8x8xbf16>
    %128 = arith.truncf %109 : vector<4x8x8xf32> to vector<4x8x8xbf16>
    "tpu.trace_start"() <{level = 10 : i32, message = "bqk,bkd->bqd"}> : () -> ()
    %cst_80 = arith.constant dense<0.000000e+00> : vector<4x8x8xf32>
    %129 = tpu.matmul %127, %128, %cst_80 {dimension_numbers = #tpu.dot_dimension_numbers<[2], [1], [1], [2], [0, 0, 0, 1, 1, 2], [0], [0]>} : vector<4x8x8xbf16>, vector<4x8x8xbf16>, vector<4x8x8xf32> -> vector<4x8x8xf32>
    "tpu.trace_stop"() : () -> ()
    %130 = vector.shape_cast %129 : vector<4x8x8xf32> to vector<32x8xf32>
    %131 = arith.truncf %130 : vector<32x8xf32> to vector<32x8xbf16>
    %c0_81 = arith.constant 0 : index
    %c1_82 = arith.constant 1 : index
    %c0_83 = arith.constant 0 : index
    %c0_84 = arith.constant 0 : index
    %132 = vector.load %arg11[%c0_81, %c1_82, %c0_83, %c0_84] : memref<1x4x8x32xbf16, #tpu.memory_space<vmem>>, vector<1x1x8x32xbf16>
    %133 = vector.shape_cast %132 : vector<1x1x8x32xbf16> to vector<8x32xbf16>
    %cst_85 = arith.constant dense<0.000000e+00> : vector<32x32xf32>
    %134 = tpu.matmul %131, %133, %cst_85 {dimension_numbers = #tpu.dot_dimension_numbers<[1], [0], [0], [1], [0, 0, 1, 1], [], []>} : vector<32x8xbf16>, vector<8x32xbf16>, vector<32x32xf32> -> vector<32x32xf32>
    %135 = arith.addf %85, %134 : vector<32x32xf32>
    %c0_86 = arith.constant 0 : index
    %c2 = arith.constant 2 : index
    %c0_87 = arith.constant 0 : index
    %c0_88 = arith.constant 0 : index
    %136 = vector.load %arg5[%c0_86, %c2, %c0_87, %c0_88] : memref<1x4x32x8xbf16, #tpu.memory_space<vmem>>, vector<1x1x32x8xbf16>
    %137 = vector.shape_cast %136 : vector<1x1x32x8xbf16> to vector<32x8xbf16>
    %cst_89 = arith.constant dense<0.000000e+00> : vector<32x8xf32>
    %138 = tpu.matmul %34, %137, %cst_89 {dimension_numbers = #tpu.dot_dimension_numbers<[1], [0], [0], [1], [0, 0, 1, 1], [], []>} : vector<32x32xbf16>, vector<32x8xbf16>, vector<32x8xf32> -> vector<32x8xf32>
    %c0_90 = arith.constant 0 : index
    %c2_91 = arith.constant 2 : index
    %c0_92 = arith.constant 0 : index
    %c0_93 = arith.constant 0 : index
    %139 = vector.load %arg6[%c0_90, %c2_91, %c0_92, %c0_93] : memref<1x4x1x8xf32, #tpu.memory_space<vmem>>, vector<1x1x1x8xf32>
    %140 = vector.shape_cast %139 : vector<1x1x1x8xf32> to vector<1x8xf32>
    %141 = vector.broadcast %140 : vector<1x8xf32> to vector<32x8xf32>
    %142 = arith.addf %138, %141 : vector<32x8xf32>
    %143 = vector.shape_cast %142 : vector<32x8xf32> to vector<4x8x8xf32>
    %c0_94 = arith.constant 0 : index
    %c2_95 = arith.constant 2 : index
    %c0_96 = arith.constant 0 : index
    %c0_97 = arith.constant 0 : index
    %144 = vector.load %arg7[%c0_94, %c2_95, %c0_96, %c0_97] : memref<1x4x32x8xbf16, #tpu.memory_space<vmem>>, vector<1x1x32x8xbf16>
    %145 = vector.shape_cast %144 : vector<1x1x32x8xbf16> to vector<32x8xbf16>
    %cst_98 = arith.constant dense<0.000000e+00> : vector<32x8xf32>
    %146 = tpu.matmul %34, %145, %cst_98 {dimension_numbers = #tpu.dot_dimension_numbers<[1], [0], [0], [1], [0, 0, 1, 1], [], []>} : vector<32x32xbf16>, vector<32x8xbf16>, vector<32x8xf32> -> vector<32x8xf32>
    %c0_99 = arith.constant 0 : index
    %c2_100 = arith.constant 2 : index
    %c0_101 = arith.constant 0 : index
    %c0_102 = arith.constant 0 : index
    %147 = vector.load %arg8[%c0_99, %c2_100, %c0_101, %c0_102] : memref<1x4x1x8xf32, #tpu.memory_space<vmem>>, vector<1x1x1x8xf32>
    %148 = vector.shape_cast %147 : vector<1x1x1x8xf32> to vector<1x8xf32>
    %149 = vector.broadcast %148 : vector<1x8xf32> to vector<32x8xf32>
    %150 = arith.addf %146, %149 : vector<32x8xf32>
    %151 = vector.shape_cast %150 : vector<32x8xf32> to vector<4x8x8xf32>
    %c0_103 = arith.constant 0 : index
    %c2_104 = arith.constant 2 : index
    %c0_105 = arith.constant 0 : index
    %c0_106 = arith.constant 0 : index
    %152 = vector.load %arg9[%c0_103, %c2_104, %c0_105, %c0_106] : memref<1x4x32x8xbf16, #tpu.memory_space<vmem>>, vector<1x1x32x8xbf16>
    %153 = vector.shape_cast %152 : vector<1x1x32x8xbf16> to vector<32x8xbf16>
    %cst_107 = arith.constant dense<0.000000e+00> : vector<32x8xf32>
    %154 = tpu.matmul %34, %153, %cst_107 {dimension_numbers = #tpu.dot_dimension_numbers<[1], [0], [0], [1], [0, 0, 1, 1], [], []>} : vector<32x32xbf16>, vector<32x8xbf16>, vector<32x8xf32> -> vector<32x8xf32>
    %c0_108 = arith.constant 0 : index
    %c2_109 = arith.constant 2 : index
    %c0_110 = arith.constant 0 : index
    %c0_111 = arith.constant 0 : index
    %155 = vector.load %arg10[%c0_108, %c2_109, %c0_110, %c0_111] : memref<1x4x1x8xf32, #tpu.memory_space<vmem>>, vector<1x1x1x8xf32>
    %156 = vector.shape_cast %155 : vector<1x1x1x8xf32> to vector<1x8xf32>
    %157 = vector.broadcast %156 : vector<1x8xf32> to vector<32x8xf32>
    %158 = arith.addf %154, %157 : vector<32x8xf32>
    %159 = vector.shape_cast %158 : vector<32x8xf32> to vector<4x8x8xf32>
    %160 = arith.truncf %143 : vector<4x8x8xf32> to vector<4x8x8xbf16>
    %161 = arith.truncf %151 : vector<4x8x8xf32> to vector<4x8x8xbf16>
    "tpu.trace_start"() <{level = 10 : i32, message = "bqd,bkd->bqk"}> : () -> ()
    %cst_112 = arith.constant dense<0.000000e+00> : vector<4x8x8xf32>
    %162 = tpu.matmul %160, %161, %cst_112 {dimension_numbers = #tpu.dot_dimension_numbers<[2], [2], [1], [1], [0, 0, 0, 1, 1, 1], [0], [0]>} : vector<4x8x8xbf16>, vector<4x8x8xbf16>, vector<4x8x8xf32> -> vector<4x8x8xf32>
    %cst_113 = arith.constant -1.000000e+30 : f32
    "tpu.trace_stop"() : () -> ()
    %163 = vector.shape_cast %7 : vector<1x8x8xi1> to vector<1x8x8xi1>
    %164 = vector.broadcast %163 : vector<1x8x8xi1> to vector<4x8x8xi1>
    %165 = vector.broadcast %cst_113 : f32 to vector<4x8x8xf32>
    %166 = arith.select %164, %162, %165 : vector<4x8x8xi1>, vector<4x8x8xf32>
    %cst_114 = arith.constant dense<0xFF800000> : vector<4x8xf32>
    %167 = vector.multi_reduction <maximumf>, %166, %cst_114 [2] : vector<4x8x8xf32> to vector<4x8xf32>
    %168 = vector.shape_cast %167 : vector<4x8xf32> to vector<4x8x1xf32>
    %169 = vector.broadcast %168 : vector<4x8x1xf32> to vector<4x8x8xf32>
    %170 = arith.subf %166, %169 : vector<4x8x8xf32>
    %171 = math.exp %170 : vector<4x8x8xf32>
    %cst_115 = arith.constant dense<0.000000e+00> : vector<4x8xf32>
    %172 = vector.multi_reduction <add>, %171, %cst_115 [2] : vector<4x8x8xf32> to vector<4x8xf32>
    %173 = vector.shape_cast %172 : vector<4x8xf32> to vector<4x8x1xf32>
    %174 = tpu.reciprocal %173 {approx = true} : vector<4x8x1xf32> -> vector<4x8x1xf32>
    %175 = vector.broadcast %174 : vector<4x8x1xf32> to vector<4x8x8xf32>
    %176 = arith.mulf %171, %175 : vector<4x8x8xf32>
    %177 = arith.truncf %176 : vector<4x8x8xf32> to vector<4x8x8xbf16>
    %178 = arith.truncf %159 : vector<4x8x8xf32> to vector<4x8x8xbf16>
    "tpu.trace_start"() <{level = 10 : i32, message = "bqk,bkd->bqd"}> : () -> ()
    %cst_116 = arith.constant dense<0.000000e+00> : vector<4x8x8xf32>
    %179 = tpu.matmul %177, %178, %cst_116 {dimension_numbers = #tpu.dot_dimension_numbers<[2], [1], [1], [2], [0, 0, 0, 1, 1, 2], [0], [0]>} : vector<4x8x8xbf16>, vector<4x8x8xbf16>, vector<4x8x8xf32> -> vector<4x8x8xf32>
    "tpu.trace_stop"() : () -> ()
    %180 = vector.shape_cast %179 : vector<4x8x8xf32> to vector<32x8xf32>
    %181 = arith.truncf %180 : vector<32x8xf32> to vector<32x8xbf16>
    %c0_117 = arith.constant 0 : index
    %c2_118 = arith.constant 2 : index
    %c0_119 = arith.constant 0 : index
    %c0_120 = arith.constant 0 : index
    %182 = vector.load %arg11[%c0_117, %c2_118, %c0_119, %c0_120] : memref<1x4x8x32xbf16, #tpu.memory_space<vmem>>, vector<1x1x8x32xbf16>
    %183 = vector.shape_cast %182 : vector<1x1x8x32xbf16> to vector<8x32xbf16>
    %cst_121 = arith.constant dense<0.000000e+00> : vector<32x32xf32>
    %184 = tpu.matmul %181, %183, %cst_121 {dimension_numbers = #tpu.dot_dimension_numbers<[1], [0], [0], [1], [0, 0, 1, 1], [], []>} : vector<32x8xbf16>, vector<8x32xbf16>, vector<32x32xf32> -> vector<32x32xf32>
    %185 = arith.addf %135, %184 : vector<32x32xf32>
    %c0_122 = arith.constant 0 : index
    %c3 = arith.constant 3 : index
    %c0_123 = arith.constant 0 : index
    %c0_124 = arith.constant 0 : index
    %186 = vector.load %arg5[%c0_122, %c3, %c0_123, %c0_124] : memref<1x4x32x8xbf16, #tpu.memory_space<vmem>>, vector<1x1x32x8xbf16>
    %187 = vector.shape_cast %186 : vector<1x1x32x8xbf16> to vector<32x8xbf16>
    %cst_125 = arith.constant dense<0.000000e+00> : vector<32x8xf32>
    %188 = tpu.matmul %34, %187, %cst_125 {dimension_numbers = #tpu.dot_dimension_numbers<[1], [0], [0], [1], [0, 0, 1, 1], [], []>} : vector<32x32xbf16>, vector<32x8xbf16>, vector<32x8xf32> -> vector<32x8xf32>
    %c0_126 = arith.constant 0 : index
    %c3_127 = arith.constant 3 : index
    %c0_128 = arith.constant 0 : index
    %c0_129 = arith.constant 0 : index
    %189 = vector.load %arg6[%c0_126, %c3_127, %c0_128, %c0_129] : memref<1x4x1x8xf32, #tpu.memory_space<vmem>>, vector<1x1x1x8xf32>
    %190 = vector.shape_cast %189 : vector<1x1x1x8xf32> to vector<1x8xf32>
    %191 = vector.broadcast %190 : vector<1x8xf32> to vector<32x8xf32>
    %192 = arith.addf %188, %191 : vector<32x8xf32>
    %193 = vector.shape_cast %192 : vector<32x8xf32> to vector<4x8x8xf32>
    %c0_130 = arith.constant 0 : index
    %c3_131 = arith.constant 3 : index
    %c0_132 = arith.constant 0 : index
    %c0_133 = arith.constant 0 : index
    %194 = vector.load %arg7[%c0_130, %c3_131, %c0_132, %c0_133] : memref<1x4x32x8xbf16, #tpu.memory_space<vmem>>, vector<1x1x32x8xbf16>
    %195 = vector.shape_cast %194 : vector<1x1x32x8xbf16> to vector<32x8xbf16>
    %cst_134 = arith.constant dense<0.000000e+00> : vector<32x8xf32>
    %196 = tpu.matmul %34, %195, %cst_134 {dimension_numbers = #tpu.dot_dimension_numbers<[1], [0], [0], [1], [0, 0, 1, 1], [], []>} : vector<32x32xbf16>, vector<32x8xbf16>, vector<32x8xf32> -> vector<32x8xf32>
    %c0_135 = arith.constant 0 : index
    %c3_136 = arith.constant 3 : index
    %c0_137 = arith.constant 0 : index
    %c0_138 = arith.constant 0 : index
    %197 = vector.load %arg8[%c0_135, %c3_136, %c0_137, %c0_138] : memref<1x4x1x8xf32, #tpu.memory_space<vmem>>, vector<1x1x1x8xf32>
    %198 = vector.shape_cast %197 : vector<1x1x1x8xf32> to vector<1x8xf32>
    %199 = vector.broadcast %198 : vector<1x8xf32> to vector<32x8xf32>
    %200 = arith.addf %196, %199 : vector<32x8xf32>
    %201 = vector.shape_cast %200 : vector<32x8xf32> to vector<4x8x8xf32>
    %c0_139 = arith.constant 0 : index
    %c3_140 = arith.constant 3 : index
    %c0_141 = arith.constant 0 : index
    %c0_142 = arith.constant 0 : index
    %202 = vector.load %arg9[%c0_139, %c3_140, %c0_141, %c0_142] : memref<1x4x32x8xbf16, #tpu.memory_space<vmem>>, vector<1x1x32x8xbf16>
    %203 = vector.shape_cast %202 : vector<1x1x32x8xbf16> to vector<32x8xbf16>
    %cst_143 = arith.constant dense<0.000000e+00> : vector<32x8xf32>
    %204 = tpu.matmul %34, %203, %cst_143 {dimension_numbers = #tpu.dot_dimension_numbers<[1], [0], [0], [1], [0, 0, 1, 1], [], []>} : vector<32x32xbf16>, vector<32x8xbf16>, vector<32x8xf32> -> vector<32x8xf32>
    %c0_144 = arith.constant 0 : index
    %c3_145 = arith.constant 3 : index
    %c0_146 = arith.constant 0 : index
    %c0_147 = arith.constant 0 : index
    %205 = vector.load %arg10[%c0_144, %c3_145, %c0_146, %c0_147] : memref<1x4x1x8xf32, #tpu.memory_space<vmem>>, vector<1x1x1x8xf32>
    %206 = vector.shape_cast %205 : vector<1x1x1x8xf32> to vector<1x8xf32>
    %207 = vector.broadcast %206 : vector<1x8xf32> to vector<32x8xf32>
    %208 = arith.addf %204, %207 : vector<32x8xf32>
    %209 = vector.shape_cast %208 : vector<32x8xf32> to vector<4x8x8xf32>
    %210 = arith.truncf %193 : vector<4x8x8xf32> to vector<4x8x8xbf16>
    %211 = arith.truncf %201 : vector<4x8x8xf32> to vector<4x8x8xbf16>
    "tpu.trace_start"() <{level = 10 : i32, message = "bqd,bkd->bqk"}> : () -> ()
    %cst_148 = arith.constant dense<0.000000e+00> : vector<4x8x8xf32>
    %212 = tpu.matmul %210, %211, %cst_148 {dimension_numbers = #tpu.dot_dimension_numbers<[2], [2], [1], [1], [0, 0, 0, 1, 1, 1], [0], [0]>} : vector<4x8x8xbf16>, vector<4x8x8xbf16>, vector<4x8x8xf32> -> vector<4x8x8xf32>
    %cst_149 = arith.constant -1.000000e+30 : f32
    "tpu.trace_stop"() : () -> ()
    %213 = vector.shape_cast %7 : vector<1x8x8xi1> to vector<1x8x8xi1>
    %214 = vector.broadcast %213 : vector<1x8x8xi1> to vector<4x8x8xi1>
    %215 = vector.broadcast %cst_149 : f32 to vector<4x8x8xf32>
    %216 = arith.select %214, %212, %215 : vector<4x8x8xi1>, vector<4x8x8xf32>
    %cst_150 = arith.constant dense<0xFF800000> : vector<4x8xf32>
    %217 = vector.multi_reduction <maximumf>, %216, %cst_150 [2] : vector<4x8x8xf32> to vector<4x8xf32>
    %218 = vector.shape_cast %217 : vector<4x8xf32> to vector<4x8x1xf32>
    %219 = vector.broadcast %218 : vector<4x8x1xf32> to vector<4x8x8xf32>
    %220 = arith.subf %216, %219 : vector<4x8x8xf32>
    %221 = math.exp %220 : vector<4x8x8xf32>
    %cst_151 = arith.constant dense<0.000000e+00> : vector<4x8xf32>
    %222 = vector.multi_reduction <add>, %221, %cst_151 [2] : vector<4x8x8xf32> to vector<4x8xf32>
    %223 = vector.shape_cast %222 : vector<4x8xf32> to vector<4x8x1xf32>
    %224 = tpu.reciprocal %223 {approx = true} : vector<4x8x1xf32> -> vector<4x8x1xf32>
    %225 = vector.broadcast %224 : vector<4x8x1xf32> to vector<4x8x8xf32>
    %226 = arith.mulf %221, %225 : vector<4x8x8xf32>
    %227 = arith.truncf %226 : vector<4x8x8xf32> to vector<4x8x8xbf16>
    %228 = arith.truncf %209 : vector<4x8x8xf32> to vector<4x8x8xbf16>
    "tpu.trace_start"() <{level = 10 : i32, message = "bqk,bkd->bqd"}> : () -> ()
    %cst_152 = arith.constant dense<0.000000e+00> : vector<4x8x8xf32>
    %229 = tpu.matmul %227, %228, %cst_152 {dimension_numbers = #tpu.dot_dimension_numbers<[2], [1], [1], [2], [0, 0, 0, 1, 1, 2], [0], [0]>} : vector<4x8x8xbf16>, vector<4x8x8xbf16>, vector<4x8x8xf32> -> vector<4x8x8xf32>
    "tpu.trace_stop"() : () -> ()
    %230 = vector.shape_cast %229 : vector<4x8x8xf32> to vector<32x8xf32>
    %231 = arith.truncf %230 : vector<32x8xf32> to vector<32x8xbf16>
    %c0_153 = arith.constant 0 : index
    %c3_154 = arith.constant 3 : index
    %c0_155 = arith.constant 0 : index
    %c0_156 = arith.constant 0 : index
    %232 = vector.load %arg11[%c0_153, %c3_154, %c0_155, %c0_156] : memref<1x4x8x32xbf16, #tpu.memory_space<vmem>>, vector<1x1x8x32xbf16>
    %233 = vector.shape_cast %232 : vector<1x1x8x32xbf16> to vector<8x32xbf16>
    %cst_157 = arith.constant dense<0.000000e+00> : vector<32x32xf32>
    %234 = tpu.matmul %231, %233, %cst_157 {dimension_numbers = #tpu.dot_dimension_numbers<[1], [0], [0], [1], [0, 0, 1, 1], [], []>} : vector<32x8xbf16>, vector<8x32xbf16>, vector<32x32xf32> -> vector<32x32xf32>
    %235 = arith.addf %185, %234 : vector<32x32xf32>
    %236 = arith.addf %3, %235 : vector<32x32xf32>
    %c0_158 = arith.constant 0 : index
    %c0_159 = arith.constant 0 : index
    %c0_160 = arith.constant 0 : index
    %237 = vector.load %arg12[%c0_158, %c0_159, %c0_160] : memref<1x1x32xf32, #tpu.memory_space<vmem>>, vector<1x1x32xf32>
    %238 = vector.shape_cast %237 : vector<1x1x32xf32> to vector<1x32xf32>
    %239 = vector.broadcast %238 : vector<1x32xf32> to vector<32x32xf32>
    %240 = arith.addf %236, %239 : vector<32x32xf32>
    %cst_161 = arith.constant dense<0.000000e+00> : vector<32xf32>
    %241 = vector.multi_reduction <add>, %240, %cst_161 [1] : vector<32x32xf32> to vector<32xf32>
    %242 = vector.shape_cast %241 : vector<32xf32> to vector<32x1xf32>
    %cst_162 = arith.constant 3.200000e+01 : f32
    %243 = vector.broadcast %cst_162 : f32 to vector<32x1xf32>
    %244 = arith.divf %242, %243 : vector<32x1xf32>
    %245 = vector.broadcast %244 : vector<32x1xf32> to vector<32x32xf32>
    %246 = arith.subf %240, %245 : vector<32x32xf32>
    %247 = arith.mulf %246, %246 : vector<32x32xf32>
    %cst_163 = arith.constant dense<0.000000e+00> : vector<32xf32>
    %248 = vector.multi_reduction <add>, %247, %cst_163 [1] : vector<32x32xf32> to vector<32xf32>
    %249 = vector.shape_cast %248 : vector<32xf32> to vector<32x1xf32>
    %cst_164 = arith.constant 3.200000e+01 : f32
    %250 = vector.broadcast %cst_164 : f32 to vector<32x1xf32>
    %251 = arith.divf %249, %250 : vector<32x1xf32>
    %252 = vector.broadcast %244 : vector<32x1xf32> to vector<32x32xf32>
    %253 = arith.subf %240, %252 : vector<32x32xf32>
    %cst_165 = arith.constant 9.99999974E-6 : f32
    %254 = vector.broadcast %cst_165 : f32 to vector<32x1xf32>
    %255 = arith.addf %251, %254 : vector<32x1xf32>
    %256 = math.rsqrt %255 : vector<32x1xf32>
    %257 = vector.broadcast %256 : vector<32x1xf32> to vector<32x32xf32>
    %258 = arith.mulf %253, %257 : vector<32x32xf32>
    %c0_166 = arith.constant 0 : index
    %c0_167 = arith.constant 0 : index
    %c0_168 = arith.constant 0 : index
    %259 = vector.load %arg13[%c0_166, %c0_167, %c0_168] : memref<1x1x32xf32, #tpu.memory_space<vmem>>, vector<1x1x32xf32>
    %260 = vector.shape_cast %259 : vector<1x1x32xf32> to vector<1x32xf32>
    %261 = vector.broadcast %260 : vector<1x32xf32> to vector<32x32xf32>
    %262 = arith.mulf %258, %261 : vector<32x32xf32>
    %c0_169 = arith.constant 0 : index
    %c0_170 = arith.constant 0 : index
    %c0_171 = arith.constant 0 : index
    %263 = vector.load %arg14[%c0_169, %c0_170, %c0_171] : memref<1x1x32xf32, #tpu.memory_space<vmem>>, vector<1x1x32xf32>
    %264 = vector.shape_cast %263 : vector<1x1x32xf32> to vector<1x32xf32>
    %265 = vector.broadcast %264 : vector<1x32xf32> to vector<32x32xf32>
    %266 = arith.addf %262, %265 : vector<32x32xf32>
    %267 = arith.truncf %266 : vector<32x32xf32> to vector<32x32xbf16>
    %c0_172 = arith.constant 0 : index
    %c0_173 = arith.constant 0 : index
    %c0_174 = arith.constant 0 : index
    %268 = vector.load %arg15[%c0_172, %c0_173, %c0_174] : memref<1x32x128xbf16, #tpu.memory_space<vmem>>, vector<1x32x128xbf16>
    %269 = vector.shape_cast %268 : vector<1x32x128xbf16> to vector<32x128xbf16>
    %cst_175 = arith.constant dense<0.000000e+00> : vector<32x128xf32>
    %270 = tpu.matmul %267, %269, %cst_175 {dimension_numbers = #tpu.dot_dimension_numbers<[1], [0], [0], [1], [0, 0, 1, 1], [], []>} : vector<32x32xbf16>, vector<32x128xbf16>, vector<32x128xf32> -> vector<32x128xf32>
    %c0_176 = arith.constant 0 : index
    %c0_177 = arith.constant 0 : index
    %c0_178 = arith.constant 0 : index
    %271 = vector.load %arg16[%c0_176, %c0_177, %c0_178] : memref<1x1x128xf32, #tpu.memory_space<vmem>>, vector<1x1x128xf32>
    %272 = vector.shape_cast %271 : vector<1x1x128xf32> to vector<1x128xf32>
    %273 = vector.broadcast %272 : vector<1x128xf32> to vector<32x128xf32>
    %274 = arith.addf %270, %273 : vector<32x128xf32>
    %cst_179 = arith.constant 1.702000e+00 : f32
    %275 = vector.broadcast %cst_179 : f32 to vector<32x128xf32>
    %276 = arith.mulf %275, %274 : vector<32x128xf32>
    %277 = arith.negf %276 : vector<32x128xf32>
    %278 = math.exp %277 : vector<32x128xf32>
    %cst_180 = arith.constant 1.000000e+00 : f32
    %279 = vector.broadcast %cst_180 : f32 to vector<32x128xf32>
    %280 = arith.addf %279, %278 : vector<32x128xf32>
    %281 = arith.divf %279, %280 : vector<32x128xf32>
    %282 = arith.mulf %274, %281 : vector<32x128xf32>
    %283 = arith.truncf %282 : vector<32x128xf32> to vector<32x128xbf16>
    %c0_181 = arith.constant 0 : index
    %c0_182 = arith.constant 0 : index
    %c0_183 = arith.constant 0 : index
    %284 = vector.load %arg17[%c0_181, %c0_182, %c0_183] : memref<1x128x32xbf16, #tpu.memory_space<vmem>>, vector<1x128x32xbf16>
    %285 = vector.shape_cast %284 : vector<1x128x32xbf16> to vector<128x32xbf16>
    %cst_184 = arith.constant dense<0.000000e+00> : vector<32x32xf32>
    %286 = tpu.matmul %283, %285, %cst_184 {dimension_numbers = #tpu.dot_dimension_numbers<[1], [0], [0], [1], [0, 0, 1, 1], [], []>} : vector<32x128xbf16>, vector<128x32xbf16>, vector<32x32xf32> -> vector<32x32xf32>
    %c0_185 = arith.constant 0 : index
    %c0_186 = arith.constant 0 : index
    %c0_187 = arith.constant 0 : index
    %287 = vector.load %arg18[%c0_185, %c0_186, %c0_187] : memref<1x1x32xf32, #tpu.memory_space<vmem>>, vector<1x1x32xf32>
    %288 = vector.shape_cast %287 : vector<1x1x32xf32> to vector<1x32xf32>
    %289 = vector.broadcast %288 : vector<1x32xf32> to vector<32x32xf32>
    %290 = arith.addf %286, %289 : vector<32x32xf32>
    %291 = arith.addf %240, %290 : vector<32x32xf32>
    %c0_188 = arith.constant 0 : index
    %c0_189 = arith.constant 0 : index
    %292 = vector.load %arg20[%c0_188, %c0_189] : memref<32x32xf32, #tpu.memory_space<vmem>>, vector<32x32xf32>
    tpu.vector_store %arg20[%c0_188, %c0_189], %291 {strides = array<i32>} : memref<32x32xf32, #tpu.memory_space<vmem>>, vector<32x32xf32>,
    %c1_i32 = arith.constant 1 : i32
    %293 = arith.cmpi eq, %arg1, %c1_i32 : i32
    %294 = arith.extui %293 : i1 to i32
    %c0_i32_190 = arith.constant 0 : i32
    %295 = arith.cmpi ne, %294, %c0_i32_190 : i32
    scf.if %295 {
      %296 = vector.shape_cast %291 : vector<32x32xf32> to vector<4x8x32xf32>
      %c0_191 = arith.constant 0 : index
      %c0_192 = arith.constant 0 : index
      %c0_193 = arith.constant 0 : index
      %297 = vector.load %arg19[%c0_191, %c0_192, %c0_193] : memref<4x8x32xf32, #tpu.memory_space<vmem>>, vector<4x8x32xf32>
      tpu.vector_store %arg19[%c0_191, %c0_192, %c0_193], %296 {strides = array<i32>} : memref<4x8x32xf32, #tpu.memory_space<vmem>>, vector<4x8x32xf32>,
    } else {
    }
    return
  }
  func.func @transform_0(%arg0: i32, %arg1: i32) -> (i32, i32, i32) {
    %c0_i32 = arith.constant 0 : i32
    %c0_i32_0 = arith.constant 0 : i32
    %c0_i32_1 = arith.constant 0 : i32
    return %arg0, %c0_i32, %c0_i32_0 : i32, i32, i32
  }
  func.func @transform_1(%arg0: i32, %arg1: i32) -> (i32, i32, i32) {
    %c0_i32 = arith.constant 0 : i32
    %c0_i32_0 = arith.constant 0 : i32
    %c0_i32_1 = arith.constant 0 : i32
    return %arg1, %c0_i32, %c0_i32_0 : i32, i32, i32
  }
  func.func @transform_2(%arg0: i32, %arg1: i32) -> (i32, i32, i32) {
    %c0_i32 = arith.constant 0 : i32
    %c0_i32_0 = arith.constant 0 : i32
    %c0_i32_1 = arith.constant 0 : i32
    return %arg1, %c0_i32, %c0_i32_0 : i32, i32, i32
  }
  func.func @transform_3(%arg0: i32, %arg1: i32) -> (i32, i32, i32, i32) {
    %c0_i32 = arith.constant 0 : i32
    %c0_i32_0 = arith.constant 0 : i32
    %c0_i32_1 = arith.constant 0 : i32
    %c0_i32_2 = arith.constant 0 : i32
    return %arg1, %c0_i32, %c0_i32_0, %c0_i32_1 : i32, i32, i32, i32
  }
  func.func @transform_4(%arg0: i32, %arg1: i32) -> (i32, i32, i32, i32) {
    %c0_i32 = arith.constant 0 : i32
    %c0_i32_0 = arith.constant 0 : i32
    %c0_i32_1 = arith.constant 0 : i32
    %c0_i32_2 = arith.constant 0 : i32
    return %arg1, %c0_i32, %c0_i32_0, %c0_i32_1 : i32, i32, i32, i32
  }
  func.func @transform_5(%arg0: i32, %arg1: i32) -> (i32, i32, i32, i32) {
    %c0_i32 = arith.constant 0 : i32
    %c0_i32_0 = arith.constant 0 : i32
    %c0_i32_1 = arith.constant 0 : i32
    %c0_i32_2 = arith.constant 0 : i32
    return %arg1, %c0_i32, %c0_i32_0, %c0_i32_1 : i32, i32, i32, i32
  }
  func.func @transform_6(%arg0: i32, %arg1: i32) -> (i32, i32, i32, i32) {
    %c0_i32 = arith.constant 0 : i32
    %c0_i32_0 = arith.constant 0 : i32
    %c0_i32_1 = arith.constant 0 : i32
    %c0_i32_2 = arith.constant 0 : i32
    return %arg1, %c0_i32, %c0_i32_0, %c0_i32_1 : i32, i32, i32, i32
  }
  func.func @transform_7(%arg0: i32, %arg1: i32) -> (i32, i32, i32, i32) {
    %c0_i32 = arith.constant 0 : i32
    %c0_i32_0 = arith.constant 0 : i32
    %c0_i32_1 = arith.constant 0 : i32
    %c0_i32_2 = arith.constant 0 : i32
    return %arg1, %c0_i32, %c0_i32_0, %c0_i32_1 : i32, i32, i32, i32
  }
  func.func @transform_8(%arg0: i32, %arg1: i32) -> (i32, i32, i32, i32) {
    %c0_i32 = arith.constant 0 : i32
    %c0_i32_0 = arith.constant 0 : i32
    %c0_i32_1 = arith.constant 0 : i32
    %c0_i32_2 = arith.constant 0 : i32
    return %arg1, %c0_i32, %c0_i32_0, %c0_i32_1 : i32, i32, i32, i32
  }
  func.func @transform_9(%arg0: i32, %arg1: i32) -> (i32, i32, i32, i32) {
    %c0_i32 = arith.constant 0 : i32
    %c0_i32_0 = arith.constant 0 : i32
    %c0_i32_1 = arith.constant 0 : i32
    %c0_i32_2 = arith.constant 0 : i32
    return %arg1, %c0_i32, %c0_i32_0, %c0_i32_1 : i32, i32, i32, i32
  }
  func.func @transform_10(%arg0: i32, %arg1: i32) -> (i32, i32, i32) {
    %c0_i32 = arith.constant 0 : i32
    %c0_i32_0 = arith.constant 0 : i32
    %c0_i32_1 = arith.constant 0 : i32
    return %arg1, %c0_i32, %c0_i32_0 : i32, i32, i32
  }
  func.func @transform_11(%arg0: i32, %arg1: i32) -> (i32, i32, i32) {
    %c0_i32 = arith.constant 0 : i32
    %c0_i32_0 = arith.constant 0 : i32
    %c0_i32_1 = arith.constant 0 : i32
    return %arg1, %c0_i32, %c0_i32_0 : i32, i32, i32
  }
  func.func @transform_12(%arg0: i32, %arg1: i32) -> (i32, i32, i32) {
    %c0_i32 = arith.constant 0 : i32
    %c0_i32_0 = arith.constant 0 : i32
    %c0_i32_1 = arith.constant 0 : i32
    return %arg1, %c0_i32, %c0_i32_0 : i32, i32, i32
  }
  func.func @transform_13(%arg0: i32, %arg1: i32) -> (i32, i32, i32) {
    %c0_i32 = arith.constant 0 : i32
    %c0_i32_0 = arith.constant 0 : i32
    %c0_i32_1 = arith.constant 0 : i32
    return %arg1, %c0_i32, %c0_i32_0 : i32, i32, i32
  }
  func.func @transform_14(%arg0: i32, %arg1: i32) -> (i32, i32, i32) {
    %c0_i32 = arith.constant 0 : i32
    %c0_i32_0 = arith.constant 0 : i32
    %c0_i32_1 = arith.constant 0 : i32
    return %arg1, %c0_i32, %c0_i32_0 : i32, i32, i32
  }
  func.func @transform_15(%arg0: i32, %arg1: i32) -> (i32, i32, i32) {
    %c0_i32 = arith.constant 0 : i32
    %c0_i32_0 = arith.constant 0 : i32
    %c0_i32_1 = arith.constant 0 : i32
    return %arg1, %c0_i32, %c0_i32_0 : i32, i32, i32
  }
  func.func @transform_16(%arg0: i32, %arg1: i32) -> (i32, i32, i32) {
    %c0_i32 = arith.constant 0 : i32
    %c0_i32_0 = arith.constant 0 : i32
    %c0_i32_1 = arith.constant 0 : i32
    return %arg1, %c0_i32, %c0_i32_0 : i32, i32, i32
  }
  func.func @transform_17(%arg0: i32, %arg1: i32) -> (i32, i32, i32) {
    %c0_i32 = arith.constant 0 : i32
    %c0_i32_0 = arith.constant 0 : i32
    %c0_i32_1 = arith.constant 0 : i32
    return %arg0, %c0_i32, %c0_i32_0 : i32, i32, i32
  }
}

</mosaic_0001>

<bundles_post_ra>
// kernel: _lambda_.1
= control target key start
LH: loop header
LB: loop body
LE: loop exit
PB: predicated region body
PF: predicated region fallthrough
CT: control target
= control target key end

     0   :  { %s5394_s24 = smov 0   ;;  %s5396_s25 = smov 0   ;;  %s6012_s0 = inlined_call_operand.vmem [shape: f32[8,8,32], index: 0, kind: input, shape index: {}]   ;;  %s6013_s1 = inlined_call_operand.vmem [shape: f32[2,1,32], index: 1, kind: input, shape index: {}, may-alias: {1,11}]   ;;  %s6014_s2 = inlined_call_operand.vmem [shape: f32[2,1,32], index: 2, kind: input, shape index: {}, may-alias: {2,10,12,16}]   ;;  %s6015_s3 = inlined_call_operand.vmem [shape: bf16[2,4,32,8], index: 3, kind: input, shape index: {}]   ;;  %s6016_s4 = inlined_call_operand.vmem [shape: f32[2,4,1,8], index: 4, kind: input, shape index: {}, may-alias: {4,6,8}]   ;;  %s6017_s5 = inlined_call_operand.vmem [shape: bf16[2,4,32,8], index: 5, kind: input, shape index: {}]   ;;  %s6018_s6 = inlined_call_operand.vmem [shape: f32[2,4,1,8], index: 6, kind: input, shape index: {}, may-alias: {4,6,8}]   ;;  %s6019_s7 = inlined_call_operand.vmem [shape: bf16[2,4,32,8], index: 7, kind: input, shape index: {}]   ;;  %s6020_s8 = inlined_call_operand.vmem [shape: f32[2,4,1,8], index: 8, kind: input, shape index: {}, may-alias: {4,6,8}]   ;;  %s6021_s9 = inlined_call_operand.vmem [shape: bf16[2,4,8,32], index: 9, kind: input, shape index: {}]   ;;  %s6022_s10 = inlined_call_operand.vmem [shape: f32[2,1,32], index: 10, kind: input, shape index: {}, may-alias: {2,10,12,16}]   ;;  %s6023_s11 = inlined_call_operand.vmem [shape: f32[2,1,32], index: 11, kind: input, shape index: {}, may-alias: {1,11}]   ;;  %s6024_s12 = inlined_call_operand.vmem [shape: f32[2,1,32], index: 12, kind: input, shape index: {}, may-alias: {2,10,12,16}]   ;;  %s6025_s13 = inlined_call_operand.vmem [shape: bf16[2,32,128], index: 13, kind: input, shape index: {}]   ;;  %s6026_s14 = inlined_call_operand.vmem [shape: f32[2,1,128], index: 14, kind: input, shape index: {}]   ;;  %s6027_s15 = inlined_call_operand.vmem [shape: bf16[2,128,32], index: 15, kind: input, shape index: {}]   ;;  %s6028_s16 = inlined_call_operand.vmem [shape: f32[2,1,32], index: 16, kind: input, shape index: {}, may-alias: {2,10,12,16}]   ;;  %s6029_s17 = inlined_call_operand.vmem [shape: f32[8,8,32], index: 17, kind: output, shape index: {}]  }
   0x1   :  { %6035 = sst [smem:[#allocation10_spill]] %s6012_s0  ;;  %s5398_s26 = smov 0  }
   0x2   :  { %6036 = sst [smem:[#allocation11_spill]] %s6013_s1  ;;  %s5400_s27 = smov 0  }
   0x3   :  { %6037 = sst [smem:[#allocation12_spill]] %s6014_s2  ;;  %s5402_s28 = smov 0  }
   0x4   :  { %6038 = sst [smem:[#allocation13_spill]] %s6015_s3 }
   0x5   :  { %6039 = sst [smem:[#allocation14_spill]] %s6016_s4 }
   0x6   :  { %6040 = sst [smem:[#allocation15_spill]] %s6017_s5 }
   0x7   :  { %6041 = sst [smem:[#allocation16_spill]] %s6018_s6 }
   0x8   :  { %6042 = sst [smem:[#allocation17_spill]] %s6019_s7 }
   0x9   :  { %6043 = sst [smem:[#allocation18_spill]] %s6020_s8 }
   0xa   :  { %6044 = sst [smem:[#allocation19_spill]] %s6021_s9 }
   0xb   :  { %6045 = sst [smem:[#allocation20_spill]] %s6022_s10 }
   0xc   :  { %6046 = sst [smem:[#allocation21_spill]] %s6023_s11 }
   0xd   :  { %6047 = sst [smem:[#allocation22_spill]] %s6024_s12 }
   0xe   :  { %6048 = sst [smem:[#allocation23_spill]] %s6027_s15 }
   0xf   :  { %6049 = sst [smem:[#allocation24_spill]] %s6028_s16 }
  0x10   :  { %6050 = sst [smem:[#allocation25_spill]] %s6029_s17 }
  0x11 LB: > { %6051 = sst [smem:[#allocation3_spill]] %s5284_s24  ;;  %s36_s29 = sadd.s32 1, %s5292_s26  ;;  %s5300_s28 = sphi %s5402_s28, %s27_s28   ;;  %s5296_s27 = sphi %s5400_s27, %s6094_s27   ;;  %s5292_s26 = sphi %s5398_s26, %s6093_s26   ;;  %s5288_s25 = sphi %s5396_s25, %s6092_s25   ;;  %s5284_s24 = sphi %s5394_s24, %s6091_s24  }
  0x12   : > { %6052 = sst [smem:[#allocation4_spill]] %s5292_s26  ;;  %s39_s0 = sadd.s32 1, %s5296_s27 }
  0x13   : > { %6053 = sst [smem:[#allocation5_spill]] %s5296_s27  ;;  %p37_p0 = scmp.ge.s32.totalorder %s36_s29, 2 }
  0x14   : > { %6054 = sst [smem:[#allocation6_spill]] %s5300_s28  ;;  %p4391_p1 = scmp.ge.s32.totalorder %s5300_s28, 1 }
  0x15   : > { %p643_p2 = scmp.lt.s32.totalorder %s5300_s28, 5  ;;  %s6096_s29 = smov (%p37_p0, %s36_s29), 0 }
  0x16   : > { %6055 = sst [smem:[#allocation7_spill]] %s6096_s29  ;;  %s6098_s0 = smov (!%p37_p0, %s39_s0), %s5296_s27 }
  0x17   : > { %p644_p3 = pnand %p4391_p1, %p643_p2  ;;  %p41_p4 = scmp.ge.s32.totalorder %s6098_s0, 2 }
  0x19   : > { %s6100_s0 = smov (%p41_p4, %s6098_s0), 0  ;;  %647 = sbr.rel (%p644_p3) target bundleno = 4711 (0x1267), region = 88 }
  0x1a   : > { %6056 = sst [smem:[#allocation8_spill]] %s6100_s0 }
  0x20   : > { %s4392_s30 = sshll.u32 %s5288_s25, 2  ;;  %p764_p5 = scmp.lt.s32.totalorder %s5284_s24, 1 }
  0x21   : > { %p759_p6 = scmp.lt.s32.totalorder %s4392_s30, 7  ;;  %s6059_s28 = sld [smem:[#allocation10_spill]] }
  0x22   : > { %s5428_s18 = scalar_select %p764_p5, %s5284_s24, 1 }
  0x23   : > { %s6102_s30 = smov (!%p759_p6, %s4392_s30), 7  ;;  %s6060_s3 = sld [smem:[#allocation13_spill]] }
  0x24   : > { %s4393_s0 = sshll.u32 %s6102_s30, 3  ;;  %s4586_s29 = sshll.u32 %s5428_s18, 6 }
  0x25   : > { %s4396_s19 = sshll.u32 %s5428_s18, 2  ;;  %s6061_s5 = sld [smem:[#allocation15_spill]] }
  0x26   : > { %s6062_s4 = sld [smem:[#allocation14_spill]]  ;;  %s6064_s6 = sld [smem:[#allocation16_spill]] }
  0x27   : > { %s762_s24 = scalar_lea.vmem %s6059_s28, %s4393_s0  ;;  %s6065_s7 = sld [smem:[#allocation17_spill]] }
  0x28   : > { %s6066_s8 = sld [smem:[#allocation18_spill]]  ;;  %s4589_s20 = sshll.u32 %s5428_s18, 4 }
  0x29   : > { %s5445_s15 = scalar_lea.vmem %s6060_s3, %s4586_s29  ;;  %s6068_s9 = sld [smem:[#allocation19_spill]] }
  0x2a   : > { %s818_s30 = scalar_lea.vmem %s6026_s14, %s5428_s18  ;;  %s6072_s16 = sld [smem:[#allocation24_spill]] }
  0x2b   : > { %s5451_s22 = scalar_lea.vmem %s6061_s5, %s4586_s29  ;;  %s6073_s2 = sld [smem:[#allocation25_spill]] }
  0x2c   : > { %s5456_s25 = scalar_lea.vmem %s6062_s4, %s4396_s19  ;;  %s5461_s27 = scalar_lea.vmem %s6064_s6, %s4396_s19 }
  0x2d   : > { %6063 = sst [smem:[#allocation9_spill]] %s5456_s25  ;;  %s5466_s28 = scalar_lea.vmem %s6065_s7, %s4586_s29 }
  0x2e   : > { %s5471_s1 = scalar_lea.vmem %s6066_s8, %s4396_s19  ;;  %s5494_s8 = scalar_lea.vmem %s6025_s13, %s4589_s20 }
  0x2f   : > { %s5481_s21 = scalar_lea.vmem %s6068_s9, %s4589_s20  ;;  %s6071_s9 = sld [smem:[#allocation23_spill]] }
  0x30   : > { %s826_s11 = scalar_lea.vmem %s6072_s16, %s5428_s18  ;;  %s6074_s20 = sld [smem:[#allocation3_spill]] }
  0x31   : > { %s5512_s12 = scalar_lea.vmem %s6073_s2, %s4393_s0 }
  0x35   : > { %s5503_s10 = scalar_lea.vmem %s6071_s9, %s4586_s29 }
  0x36   : > { %p4411_p7 = scmp.ne.s32.totalorder %s6074_s20, 0 }
  0x37   : > { %v838_v0 = vld [vmem:[%s762_s24] sm:$0xff] (!%p4411_p7)  ;;  %vm842_vm0 = vcmask (!%p4411_p7), 261120   ;;  %v839_v1 = vld [vmem:[%s762_s24 + $0x8] sm:$0xff] (!%p4411_p7)  ;;  %v840_v2 = vld [vmem:[%s762_s24 + $0x10] sm:$0xff] (!%p4411_p7) }
  0x38   : > { %837 = sbr.rel (%p4411_p7) target bundleno = 63 (0x3f), region = 92  ;;  %843 = vst.msk [vmem:[#allocation2] sm:$0xff] (!%p4411_p7), %vm842_vm0, %v838_v0  ;;  %844 = vst.msk [vmem:[#allocation2 + $0x8] sm:$0xff] (!%p4411_p7), %vm842_vm0, %v839_v1  ;;  %v841_v3 = vld [vmem:[%s762_s24 + $0x18] sm:$0xff] (!%p4411_p7) }
  0x39   : > { %845 = vst.msk [vmem:[#allocation2 + $0x10] sm:$0xff] (!%p4411_p7), %vm842_vm0, %v840_v2  ;;  %846 = vst.msk [vmem:[#allocation2 + $0x18] sm:$0xff] (!%p4411_p7), %vm842_vm0, %v841_v3 }
  0x3f PF: > { %v847_v4 = vld [vmem:[#allocation2] sm:$0xff]  ;;  %vm856_vm1 = vcmask 261120   ;;  %v848_v6 = vld [vmem:[#allocation2 + $0x8] sm:$0xff]  ;;  %s6075_s29 = sld [smem:[#allocation11_spill]]  ;;  %s6077_s3 = sld [smem:[#allocation12_spill]]  ;;  %vm5303_vm2 = vmmov 0  }
  0x40   : > { %v849_v5 = vld [vmem:[#allocation2 + $0x10] sm:$0xff]  ;;  %v857_v7 = vsel %vm856_vm1, %v847_v4, 0.0  ;;  %v850_v9 = vld [vmem:[#allocation2 + $0x18] sm:$0xff]  ;;  %v860_v10 = vsel %vm856_vm1, %v848_v6, 0.0  ;;  %v5128_v32 = vld [vmem:[%s5445_s15] sm:$0xff]   ;;  %s6079_s5 = sld [smem:[#allocation9_spill]] }
  0x41   : > { %v863_v8 = vsel %vm856_vm1, %v849_v5, 0.0  ;;  %858 = vadd.xlane.f32.xlu0 %v857_v7  ;;  %v866_v11 = vsel %vm856_vm1, %v850_v9, 0.0  ;;  %4730 = vmatprep.subr.bf16.mxu0 %v5128_v32  ;;  %v5129_v33 = vld [vmem:[%s5445_s15 + $0x8] sm:$0xff]   ;;  %v5130_v34 = vld [vmem:[%s5451_s22] sm:$0xff]   ;;  %vm1164_vm3 = vcmask 64512   ;;  %vm1410_vm4 = vcmask 1043456  }
  0x42   : > { %864 = vadd.xlane.f32.xlu1 %v863_v8  ;;  %4731 = vmatpush3.bf16.msra.mxu0 %v5128_v32  ;;  %v5131_v3 = vld [vmem:[%s5451_s22 + $0x8] sm:$0xff]   ;;  %s6086_s6 = sld [smem:[#allocation22_spill]] }
  0x43   : > { %4732 = vmatprep.subr.bf16.mxu0 %v5129_v33 }
  0x45   : > { %861 = vadd.xlane.f32.xlu0 %v860_v10  ;;  %s6076_s0 = scalar_lea.vmem %s6075_s29, %s5428_s18  ;;  %s6078_s19 = scalar_lea.vmem %s6077_s3, %s5428_s18 }
  0x46   : > { %867 = vadd.xlane.f32.xlu1 %v866_v11  ;;  %4733 = vmatpush3.bf16.msra.mxu0 %v5129_v33  ;;  %v4412_v49 = vld [vmem:[%s6076_s0] ss:$0 sm:$0xff] }
  0x47   : > { %4738 = vmatprep.subr.bf16.mxu0 %v5130_v34  ;;  %v4413_v54 = vld [vmem:[%s6078_s19] ss:$0 sm:$0xff] }
  0x48   : > { %v4419_v11 = vld [vmem:[%s5461_s27] ss:$0 sm:$0xff]  ;;  %s6087_s26 = scalar_lea.vmem %s6086_s6, %s5428_s18 }
  0xce   : > { %v859_v12 = vpop.xlane.xlu0 %858 }
  0xcf   : > { %v865_v13 = vpop.xlane.xlu1 %864  ;;  %v870_v14 = vmul.f32 0.03125, %v859_v12 }
  0xd0   : > { %v872_v15 = vmul.f32 0.03125, %v865_v13 }
  0xd1   : > { %v874_v16 = vsub.f32 %v847_v4, %v870_v14  ;;  %v5132_v4 = vld [vmem:[%s5466_s28] sm:$0xff]  }
  0xd2   : > { %v876_v17 = vsub.f32 %v849_v5, %v872_v15  ;;  %v862_v18 = vpop.xlane.xlu0 %861  ;;  %v5133_v5 = vld [vmem:[%s5466_s28 + $0x8] sm:$0xff]  }
  0xd3   : > { %v868_v19 = vpop.xlane.xlu1 %867  ;;  %v871_v20 = vmul.f32 0.03125, %v862_v18  ;;  %v878_v22 = vmul.f32 %v874_v16, %v874_v16 }
  0xd4   : > { %v873_v21 = vmul.f32 0.03125, %v868_v19  ;;  %v880_v23 = vmul.f32 %v876_v17, %v876_v17  ;;  %v4414_v19 = vld [vmem:[%s6079_s5] ss:$0 sm:$0xff] }
  0xd5   : > { %v875_v24 = vsub.f32 %v848_v6, %v871_v20  ;;  %v882_v26 = vsel %vm856_vm1, %v878_v22, 0.0  ;;  %v5302_v6 = vmov 0.0  }
  0xd6   : > { %v877_v25 = vsub.f32 %v850_v9, %v873_v21  ;;  %883 = vadd.xlane.f32.xlu0 %v882_v26  ;;  %v888_v27 = vsel %vm856_vm1, %v880_v23, 0.0  ;;  %4754 = vmatprep.subr.bf16.mxu1 %v5302_v6  ;;  %v4424_v23 = vld [vmem:[%s5471_s1] ss:$0 sm:$0xff] }
  0xd7   : > { %v879_v28 = vmul.f32 %v875_v24, %v875_v24  ;;  %4756 = vmatprep.mubr.msk.bf16.mxu1 %vm5303_vm2, %v5302_v6 }
  0xd8   : > { %v881_v29 = vmul.f32 %v877_v25, %v877_v25 }
  0xd9   : > { %v885_v30 = vsel %vm856_vm1, %v879_v28, 0.0 }
  0xda   : > { %889 = vadd.xlane.f32.xlu0 %v888_v27  ;;  %886 = vadd.xlane.f32.xlu1 %v885_v30  ;;  %v891_v31 = vsel %vm856_vm1, %v881_v29, 0.0 }
  0xde   : > { %892 = vadd.xlane.f32.xlu1 %v891_v31 }
 0x163   : > { %v884_v35 = vpop.xlane.xlu0 %883 }
 0x164   : > { %v894_v36 = vmul.f32 0.03125, %v884_v35 }
 0x166   : > { %v898_v37 = vadd.f32 1e-05, %v894_v36 }
 0x167   : > { %v887_v38 = vpop.xlane.xlu1 %886  ;;  %v890_v39 = vpop.xlane.xlu0 %889 }
 0x168   : > { %5162 = vrsqrt.f32 %v898_v37  ;;  %v895_v40 = vmul.f32 0.03125, %v887_v38  ;;  %v896_v41 = vmul.f32 0.03125, %v890_v39 }
 0x16a   : > { %v899_v42 = vadd.f32 1e-05, %v895_v40  ;;  %v900_v43 = vadd.f32 1e-05, %v896_v41 }
 0x16b   : > { %v893_v44 = vpop.xlane.xlu1 %892 }
 0x16c   : > { %5164 = vrsqrt.f32 %v899_v42  ;;  %v897_v45 = vmul.f32 0.03125, %v893_v44 }
 0x16d   : > { %5166 = vrsqrt.f32 %v900_v43 }
 0x16e   : > { %v901_v46 = vadd.f32 1e-05, %v897_v45 }
 0x170   : > { %5168 = vrsqrt.f32 %v901_v46 }
 0x172   : > { %v5163_v47 = vpop.eup %5162 }
 0x173   : > { %v906_v48 = vmul.f32 %v5163_v47, %v874_v16 }
 0x175   : > { %v917_v52 = vmul.f32 %v4412_v49, %v906_v48 }
 0x176   : > { %v5165_v50 = vpop.eup %5164 }
 0x177   : > { %v5167_v51 = vpop.eup %5166  ;;  %v907_v53 = vmul.f32 %v5165_v50, %v875_v24  ;;  %v928_v58 = vadd.f32 %v4413_v54, %v917_v52  ;;  %v851_v50 = vlaneseq }
 0x178   : > { %v908_v55 = vmul.f32 %v5167_v51, %v876_v17 }
 0x179   : > { %v918_v56 = vmul.f32 %v4412_v49, %v907_v53  ;;  %v852_v51 = vshrl.u32 %v851_v50, 7  ;;  %v854_v52 = vand.u32 127, %v851_v50  ;;  %v5134_v50 = vld [vmem:[%s5445_s15 + $0x10] sm:$0xff]  }
 0x17a   : > { %v5169_v57 = vpop.eup %5168  ;;  %v919_v60 = vmul.f32 %v4412_v49, %v908_v55 }
 0x17b   : > { %v929_v59 = vadd.f32 %v4413_v54, %v918_v56  ;;  %v909_v61 = vmul.f32 %v5169_v57, %v877_v25  ;;  %vm5592_vm5 = vcmp.le.s32.totalorder %v854_v52, %v852_v51 }
 0x17c   : > { %v930_v0 = vadd.f32 %v4413_v54, %v919_v60 }
 0x17d   : > { %v5536_v62 = vpack.c.bf16 %v929_v59, %v928_v58  ;;  %v920_v63 = vmul.f32 %v4412_v49, %v909_v61 }
 0x17f   : > { %v931_v1 = vadd.f32 %v4413_v54, %v920_v63  ;;  %4734 = vmatprep.mubr.msk.bf16.mxu0 %vm856_vm1, %v5536_v62 }
 0x181   : > { %v5540_v2 = vpack.c.bf16 %v931_v1, %v930_v0 }
 0x183   : > { %4735 = vmatmul.mubr.msk.bf16.vlgmr.msra.gmra.mrb[0].mxu0 %vm856_vm1, %v5540_v2 }
 0x184   : > { %4739 = vmatpush3.bf16.msra.mxu0 %v5130_v34  ;;  %4742 = vmatprep.mubr.msk.bf16.mxu0 %vm856_vm1, %v5536_v62 }
 0x185   : > { %4740 = vmatprep.subr.bf16.mxu0 %v5131_v3 }
 0x188   : > { %4741 = vmatpush3.bf16.msra.mxu0 %v5131_v3 }
 0x189   : > { %4746 = vmatprep.subr.bf16.mxu0 %v5132_v4 }
 0x18b   : > { %4743 = vmatmul.mubr.msk.bf16.vlgmr.msra.gmra.mrb[4].mxu0 %vm856_vm1, %v5540_v2 }
 0x18c   : > { %4747 = vmatpush3.bf16.msra.mxu0 %v5132_v4  ;;  %4750 = vmatprep.mubr.msk.bf16.mxu0 %vm856_vm1, %v5536_v62 }
 0x18d   : > { %4748 = vmatprep.subr.bf16.mxu0 %v5133_v5 }
 0x190   : > { %4749 = vmatpush3.bf16.msra.mxu0 %v5133_v5 }
 0x191   : > { %4760 = vmatprep.subr.bf16.mxu0 %v5302_v6 }
 0x193   : > { %4751 = vmatmul.mubr.msk.bf16.vlgmr.msra.gmra.mrb[8].mxu0 %vm856_vm1, %v5540_v2 }
 0x194   : > { %4762 = vmatprep.mubr.msk.bf16.mxu0 %vm5303_vm2, %v5302_v6 }
 0x256   : > { %v4736_v7 = vpop.f32.mrb[0].mxu0 }
 0x257   : > { %v997_v8 = vpop.f32.mrb[1].mxu0  ;;  %v1006_v40 = vadd.f32 %v4736_v7, %v4414_v19 }
 0x258   : > { %v4737_v9 = vpop.f32.mrb[2].mxu0  ;;  %v998_v24 = vadd.f32 %v4414_v19, %v997_v8 }
 0x259   : > { %v1000_v10 = vpop.f32.mrb[3].mxu0  ;;  %v1009_v43 = vadd.f32 %v4737_v9, %v4414_v19  ;;  %v1158_v45 = vpack.c.bf16 %v1006_v40, %v1006_v40 }
 0x25a   : > { %v1001_v30 = vadd.f32 %v4414_v19, %v1000_v10  ;;  %v1156_v35 = vpack.c.bf16 %v998_v24, %v998_v24 }
 0x25b   : > { %v1159_v47 = vpack.c.bf16 %v1009_v43, %v1009_v43 }
 0x25c   : > { %v1157_v37 = vpack.c.bf16 %v1001_v30, %v1001_v30 }
 0x25e   : > { %v4744_v12 = vpop.f32.mrb[4].mxu0 }
 0x25f   : > { %v1069_v13 = vpop.f32.mrb[5].mxu0  ;;  %v1078_v20 = vadd.f32 %v4744_v12, %v4419_v11 }
 0x260   : > { %v1070_v14 = vadd.f32 %v4419_v11, %v1069_v13  ;;  %v4745_v15 = vpop.f32.mrb[6].mxu0 }
 0x261   : > { %v1072_v16 = vpop.f32.mrb[7].mxu0  ;;  %v1081_v25 = vadd.f32 %v4745_v15, %v4419_v11  ;;  %v1162_v31 = vpack.c.bf16 %v1078_v20, %v1078_v20 }
 0x262   : > { %v1160_v17 = vpack.c.bf16 %v1070_v14, %v1070_v14  ;;  %v1073_v18 = vadd.f32 %v4419_v11, %v1072_v16 }
 0x263   : > { %v1163_v36 = vpack.c.bf16 %v1081_v25, %v1081_v25  ;;  %v1261_v38 = vsel %vm1164_vm3, %v1162_v31, 0 }
 0x264   : > { %v1161_v21 = vpack.c.bf16 %v1073_v18, %v1073_v18  ;;  %v1169_v22 = vsel %vm1164_vm3, %v1160_v17, 0 }
 0x265   : > { %4755 = vmatpush3.bf16.xpose.msra.mxu1 %v1169_v22  ;;  %v1307_v41 = vsel %vm1164_vm3, %v1163_v36, 0 }
 0x266   : > { %v1215_v26 = vsel %vm1164_vm3, %v1161_v21, 0  ;;  %v4752_v27 = vpop.f32.mrb[8].mxu0  ;;  %4766 = vmatprep.subr.bf16.mxu1 %v5302_v6 }
 0x267   : > { %v5567_v28 = vadd.f32 %v4752_v27, %v4424_v23  ;;  %v1141_v29 = vpop.f32.mrb[9].mxu0  ;;  %4761 = vmatpush3.bf16.xpose.msra.mxu0 %v1215_v26 }
 0x268   : > { %v4753_v32 = vpop.f32.mrb[10].mxu0  ;;  %4772 = vmatprep.subr.bf16.mxu0 %v5302_v6  ;;  %v1142_v39 = vadd.f32 %v4424_v23, %v1141_v29 }
 0x269   : > { %v5570_v33 = vadd.f32 %v4753_v32, %v4424_v23  ;;  %v1144_v34 = vpop.f32.mrb[11].mxu0 }
 0x26a   : > { %v1145_v42 = vadd.f32 %v4424_v23, %v1144_v34  ;;  %v1403_v44 = vpack.c.bf16 %v1142_v39, %v1142_v39 }
 0x26c   : > { %4757 = vmatmul.mubr.msk.bf16.vlgmr.msra.gmra.mrb[0].mxu1 %vm1164_vm3, %v1156_v35  ;;  %v1404_v46 = vpack.c.bf16 %v1145_v42, %v1145_v42  ;;  %v1412_v48 = vsel %vm1410_vm4, %v1403_v44, 0  ;;  %v1405_v44 = vpack.c.bf16 %v5567_v28, %v5567_v28 }
 0x26d   : > { %4767 = vmatpush3.bf16.xpose.msra.mxu1 %v1261_v38  ;;  %4768 = vmatprep.mubr.msk.bf16.mxu1 %vm5303_vm2, %v5302_v6 }
 0x26e   : > { %4763 = vmatmul.mubr.msk.bf16.vlgmr.msra.gmra.mrb[12].mxu0 %vm1164_vm3, %v1157_v37  ;;  %4778 = vmatprep.subr.bf16.mxu1 %v5302_v6  ;;  %v1458_v49 = vsel %vm1410_vm4, %v1404_v46, 0  ;;  %v1504_v51 = vsel %vm1410_vm4, %v1405_v44, 0 }
 0x26f   : > { %4773 = vmatpush3.bf16.xpose.msra.mxu0 %v1307_v41  ;;  %4774 = vmatprep.mubr.msk.bf16.mxu0 %vm5303_vm2, %v5302_v6 }
 0x270   : > { %4784 = vmatprep.subr.bf16.mxu0 %v5302_v6 }
 0x274   : > { %4769 = vmatmul.mubr.msk.bf16.vlgmr.msra.gmra.mrb[4].mxu1 %vm1164_vm3, %v1158_v45 }
 0x275   : > { %4779 = vmatpush3.bf16.msra.mxu1 %v1412_v48  ;;  %4780 = vmatprep.mubr.msk.bf16.mxu1 %vm5303_vm2, %v5302_v6 }
 0x276   : > { %4775 = vmatmul.mubr.msk.bf16.vlgmr.msra.gmra.mrb[16].mxu0 %vm1164_vm3, %v1159_v47  ;;  %4790 = vmatprep.subr.bf16.mxu1 %v5302_v6  ;;  %v1406_v47 = vpack.c.bf16 %v5570_v33, %v5570_v33 }
 0x277   : > { %4785 = vmatpush3.bf16.msra.mxu0 %v1458_v49  ;;  %4786 = vmatprep.mubr.msk.bf16.mxu0 %vm5303_vm2, %v5302_v6 }
 0x278   : > { %4796 = vmatprep.subr.bf16.mxu0 %v5302_v6  ;;  %v1550_v28 = vsel %vm1410_vm4, %v1406_v47, 0 }
 0x33f   : > { %v1205_v54 = vpop.f32.mrb[0].mxu1 }
 0x340   : > { %v1351_v55 = vsel %vm5592_vm5, %v1205_v54, -1e+30  ;;  %v4758_v56 = vpop.f32.mrb[1].mxu1  ;;  %v5135_v54 = vld [vmem:[%s5451_s22 + $0x10] sm:$0xff]  }
 0x341   : > { %v1208_v57 = vpop.f32.mrb[2].mxu1  ;;  %v1251_v58 = vpop.f32.mrb[12].mxu0  ;;  %v1355_v59 = vsel %vm1164_vm3, %v1351_v55, -inf }
 0x342   : > { %v1352_v60 = vsel %vm5592_vm5, %v1251_v58, -1e+30  ;;  %v4764_v61 = vpop.f32.mrb[13].mxu0  ;;  %1356 = vmax.xlane.f32.xlu1 %v1355_v59  ;;  %v4759_v63 = vpop.f32.mrb[3].mxu1  ;;  %v5136_v59 = vld [vmem:[%s5445_s15 + $0x18] sm:$0xff]  }
 0x343   : > { %v1254_v0 = vpop.f32.mrb[14].mxu0  ;;  %v1358_v1 = vsel %vm1164_vm3, %v1352_v60, -inf  ;;  %v5137_v61 = vld [vmem:[%s5451_s22 + $0x18] sm:$0xff]   ;;  %v5138_v63 = vld [vmem:[%s5466_s28 + $0x10] sm:$0xff]  }
 0x344   : > { %1359 = vmax.xlane.f32.xlu0 %v1358_v1  ;;  %v4765_v3 = vpop.f32.mrb[15].mxu0  ;;  %v5139_v0 = vld [vmem:[%s5466_s28 + $0x18] sm:$0xff]  }
 0x347   : > { %v1297_v4 = vpop.f32.mrb[4].mxu1 }
 0x348   : > { %v1353_v5 = vsel %vm5592_vm5, %v1297_v4, -1e+30  ;;  %v4770_v7 = vpop.f32.mrb[5].mxu1 }
 0x349   : > { %v1300_v8 = vpop.f32.mrb[6].mxu1  ;;  %v1343_v9 = vpop.f32.mrb[16].mxu0  ;;  %v1361_v10 = vsel %vm1164_vm3, %v1353_v5, -inf }
 0x34a   : > { %v1354_v11 = vsel %vm5592_vm5, %v1343_v9, -1e+30  ;;  %v4776_v12 = vpop.f32.mrb[17].mxu0  ;;  %1362 = vmax.xlane.f32.xlu1 %v1361_v10  ;;  %v4771_v13 = vpop.f32.mrb[7].mxu1 }
 0x34b   : > { %v1346_v14 = vpop.f32.mrb[18].mxu0  ;;  %v1364_v15 = vsel %vm1164_vm3, %v1354_v11, -inf }
 0x34c   : > { %1365 = vmax.xlane.f32.xlu0 %v1364_v15  ;;  %v4777_v16 = vpop.f32.mrb[19].mxu0 }
 0x3cf   : > { %v1357_v17 = vpop.xlane.xlu1 %1356 }
 0x3d0   : > { %v1367_v18 = vsub.f32 %v1351_v55, %v1357_v17 }
 0x3d1   : > { %v1360_v19 = vpop.xlane.xlu0 %1359 }
 0x3d2   : > { %v1371_v20 = vmul.f32 1.442695, %v1367_v18  ;;  %v1368_v21 = vsub.f32 %v1352_v60, %v1360_v19 }
 0x3d4   : > { %5170 = vpow2.f32 %v1371_v20  ;;  %v1373_v22 = vmul.f32 1.442695, %v1368_v21 }
 0x3d6   : > { %5172 = vpow2.f32 %v1373_v22 }
 0x3d7   : > { %v1363_v23 = vpop.xlane.xlu1 %1362 }
 0x3d8   : > { %v1369_v24 = vsub.f32 %v1353_v5, %v1363_v23  ;;  %v4452_v23 = vld [vmem:[%s5461_s27 + $0x1] ss:$0 sm:$0xff] }
 0x3d9   : > { %v1366_v25 = vpop.xlane.xlu0 %1365 }
 0x3da   : > { %v1375_v26 = vmul.f32 1.442695, %v1369_v24  ;;  %v1370_v27 = vsub.f32 %v1354_v11, %v1366_v25 }
 0x3dc   : > { %5174 = vpow2.f32 %v1375_v26  ;;  %v1377_v29 = vmul.f32 1.442695, %v1370_v27 }
 0x3de   : > { %v5171_v30 = vpop.eup %5170  ;;  %5176 = vpow2.f32 %v1377_v29 }
 0x3df   : > { %v1379_v31 = vsel %vm1164_vm3, %v5171_v30, 0.0 }
 0x3e0   : > { %v5173_v32 = vpop.eup %5172  ;;  %1380 = vadd.xlane.f32.xlu1 %v1379_v31 }
 0x3e1   : > { %v1382_v34 = vsel %vm1164_vm3, %v5173_v32, 0.0 }
 0x3e2   : > { %1383 = vadd.xlane.f32.xlu0 %v1382_v34 }
 0x3e6   : > { %v5175_v35 = vpop.eup %5174 }
 0x3e7   : > { %v1385_v36 = vsel %vm1164_vm3, %v5175_v35, 0.0 }
 0x3e8   : > { %v5177_v37 = vpop.eup %5176  ;;  %1386 = vadd.xlane.f32.xlu1 %v1385_v36  ;;  %v4442_v36 = vld [vmem:[%s6079_s5 + $0x1] ss:$0 sm:$0xff] }
 0x3e9   : > { %v1388_v38 = vsel %vm1164_vm3, %v5177_v37, 0.0 }
 0x3ea   : > { %1389 = vadd.xlane.f32.xlu0 %v1388_v38 }
 0x46d   : > { %v1381_v39 = vpop.xlane.xlu1 %1380 }
 0x46e   : > { %5178 = vrcp.f32 %v1381_v39 }
 0x46f   : > { %v1384_v40 = vpop.xlane.xlu0 %1383 }
 0x470   : > { %5180 = vrcp.f32 %v1384_v40 }
 0x475   : > { %v1387_v41 = vpop.xlane.xlu1 %1386 }
 0x476   : > { %5182 = vrcp.f32 %v1387_v41 }
 0x477   : > { %v1390_v42 = vpop.xlane.xlu0 %1389 }
 0x478   : > { %v5179_v43 = vpop.eup %5178  ;;  %5184 = vrcp.f32 %v1390_v42 }
 0x479   : > { %v1395_v45 = vmul.f32 %v5179_v43, %v5171_v30 }
 0x47a   : > { %v5181_v46 = vpop.eup %5180 }
 0x47b   : > { %v1396_v48 = vmul.f32 %v5181_v46, %v5173_v32  ;;  %v1399_v49 = vpack.c.bf16 %v1395_v45, %v1395_v45 }
 0x47d   : > { %4781 = vmatmul.mubr.msk.bf16.vlgmr.msra.gmra.mrb[8].mxu1 %vm1164_vm3, %v1399_v49  ;;  %v1400_v52 = vpack.c.bf16 %v1396_v48, %v1396_v48 }
 0x47e   : > { %4791 = vmatpush3.bf16.msra.mxu1 %v1504_v51  ;;  %4792 = vmatprep.mubr.msk.bf16.mxu1 %vm5303_vm2, %v5302_v6 }
 0x47f   : > { %4787 = vmatmul.mubr.msk.bf16.vlgmr.msra.gmra.mrb[20].mxu0 %vm1164_vm3, %v1400_v52  ;;  %4802 = vmatprep.subr.bf16.mxu1 %v5134_v50 }
 0x480   : > { %v5183_v33 = vpop.eup %5182  ;;  %4797 = vmatpush3.bf16.msra.mxu0 %v1550_v28  ;;  %4798 = vmatprep.mubr.msk.bf16.mxu0 %vm5303_vm2, %v5302_v6 }
 0x481   : > { %v1397_v55 = vmul.f32 %v5183_v33, %v5175_v35  ;;  %4810 = vmatprep.subr.bf16.mxu0 %v5135_v54  ;;  %v4462_v35 = vld [vmem:[%s5471_s1 + $0x1] ss:$0 sm:$0xff] }
 0x482   : > { %v5185_v56 = vpop.eup %5184 }
 0x483   : > { %v1398_v57 = vmul.f32 %v5185_v56, %v5177_v37  ;;  %v1401_v58 = vpack.c.bf16 %v1397_v55, %v1397_v55 }
 0x485   : > { %4793 = vmatmul.mubr.msk.bf16.vlgmr.msra.gmra.mrb[12].mxu1 %vm1164_vm3, %v1401_v58  ;;  %v1402_v60 = vpack.c.bf16 %v1398_v57, %v1398_v57 }
 0x486   : > { %4803 = vmatpush3.bf16.msra.mxu1 %v5134_v50  ;;  %4806 = vmatprep.mubr.msk.bf16.mxu1 %vm856_vm1, %v5536_v62 }
 0x487   : > { %4799 = vmatmul.mubr.msk.bf16.vlgmr.msra.gmra.mrb[24].mxu0 %vm1164_vm3, %v1402_v60  ;;  %4804 = vmatprep.subr.bf16.mxu1 %v5136_v59 }
 0x488   : > { %4811 = vmatpush3.bf16.msra.mxu0 %v5135_v54  ;;  %4814 = vmatprep.mubr.msk.bf16.mxu0 %vm856_vm1, %v5536_v62 }
 0x489   : > { %4812 = vmatprep.subr.bf16.mxu0 %v5137_v61 }
 0x48a   : > { %4805 = vmatpush3.bf16.msra.mxu1 %v5136_v59 }
 0x48b   : > { %4818 = vmatprep.subr.bf16.mxu1 %v5138_v63 }
 0x48c   : > { %4813 = vmatpush3.bf16.msra.mxu0 %v5137_v61 }
 0x48d   : > { %4807 = vmatmul.mubr.msk.bf16.vlgmr.msra.gmra.mrb[16].mxu1 %vm856_vm1, %v5540_v2  ;;  %4826 = vmatprep.subr.bf16.mxu0 %v5302_v6 }
 0x48e   : > { %4819 = vmatpush3.bf16.msra.mxu1 %v5138_v63  ;;  %4822 = vmatprep.mubr.msk.bf16.mxu1 %vm856_vm1, %v5536_v62 }
 0x48f   : > { %4815 = vmatmul.mubr.msk.bf16.vlgmr.msra.gmra.mrb[28].mxu0 %vm856_vm1, %v5540_v2  ;;  %4820 = vmatprep.subr.bf16.mxu1 %v5139_v0 }
 0x490   : > { %4828 = vmatprep.mubr.msk.bf16.mxu0 %vm5303_vm2, %v5302_v6 }
 0x492   : > { %4821 = vmatpush3.bf16.msra.mxu1 %v5139_v0 }
 0x493   : > { %4832 = vmatprep.subr.bf16.mxu1 %v5302_v6 }
 0x495   : > { %4823 = vmatmul.mubr.msk.bf16.vlgmr.msra.gmra.mrb[20].mxu1 %vm856_vm1, %v5540_v2 }
 0x496   : > { %4834 = vmatprep.mubr.msk.bf16.mxu1 %vm5303_vm2, %v5302_v6 }
 0x550   : > { %v5650_v1 = vpop.f32.mrb[8].mxu1 }
 0x551   : > { %v4782_v3 = vpop.f32.mrb[9].mxu1 }
 0x552   : > { %v1451_v4 = vpop.f32.mrb[10].mxu1  ;;  %v5652_v5 = vpop.f32.mrb[20].mxu0 }
 0x553   : > { %v1592_v7 = vpack.c.bf16 %v5652_v5, %v5650_v1  ;;  %v4783_v8 = vpop.f32.mrb[11].mxu1  ;;  %v4788_v9 = vpop.f32.mrb[21].mxu0 }
 0x554   : > { %v1497_v10 = vpop.f32.mrb[22].mxu0 }
 0x555   : > { %v4789_v11 = vpop.f32.mrb[23].mxu0 }
 0x558   : > { %v5656_v12 = vpop.f32.mrb[12].mxu1 }
 0x559   : > { %v4794_v13 = vpop.f32.mrb[13].mxu1 }
 0x55a   : > { %v1543_v14 = vpop.f32.mrb[14].mxu1  ;;  %v5658_v15 = vpop.f32.mrb[24].mxu0 }
 0x55b   : > { %v1593_v16 = vpack.c.bf16 %v5658_v15, %v5656_v12  ;;  %v4795_v17 = vpop.f32.mrb[15].mxu1  ;;  %v4800_v18 = vpop.f32.mrb[25].mxu0 }
 0x55c   : > { %v1589_v19 = vpop.f32.mrb[26].mxu0 }
 0x55d   : > { %v4801_v20 = vpop.f32.mrb[27].mxu0 }
 0x560   : > { %v4808_v21 = vpop.f32.mrb[16].mxu1 }
 0x561   : > { %v1654_v22 = vpop.f32.mrb[17].mxu1  ;;  %v1663_v55 = vadd.f32 %v4808_v21, %v4442_v36 }
 0x562   : > { %v4809_v24 = vpop.f32.mrb[18].mxu1  ;;  %v4816_v25 = vpop.f32.mrb[28].mxu0  ;;  %v1655_v43 = vadd.f32 %v4442_v36, %v1654_v22 }
 0x563   : > { %v1657_v26 = vpop.f32.mrb[19].mxu1  ;;  %v1728_v27 = vpop.f32.mrb[29].mxu0  ;;  %v1737_v37 = vadd.f32 %v4816_v25, %v4452_v23  ;;  %v1666_v58 = vadd.f32 %v4809_v24, %v4442_v36  ;;  %v1819_v60 = vpack.c.bf16 %v1663_v55, %v1663_v55 }
 0x564   : > { %v1729_v29 = vadd.f32 %v4452_v23, %v1728_v27  ;;  %v4817_v30 = vpop.f32.mrb[30].mxu0  ;;  %v1658_v50 = vadd.f32 %v4442_v36, %v1657_v26  ;;  %v1817_v51 = vpack.c.bf16 %v1655_v43, %v1655_v43 }
 0x565   : > { %v1731_v31 = vpop.f32.mrb[31].mxu0  ;;  %v1740_v44 = vadd.f32 %v4817_v30, %v4452_v23  ;;  %v1823_v49 = vpack.c.bf16 %v1737_v37, %v1737_v37  ;;  %v1820_v63 = vpack.c.bf16 %v1666_v58, %v1666_v58 }
 0x566   : > { %v1821_v32 = vpack.c.bf16 %v1729_v29, %v1729_v29  ;;  %v1732_v34 = vadd.f32 %v4452_v23, %v1731_v31  ;;  %v1818_v28 = vpack.c.bf16 %v1658_v50, %v1658_v50 }
 0x567   : > { %v1824_v52 = vpack.c.bf16 %v1740_v44, %v1740_v44  ;;  %v1921_v54 = vsel %vm1164_vm3, %v1823_v49, 0 }
 0x568   : > { %v1829_v38 = vsel %vm1164_vm3, %v1821_v32, 0  ;;  %v1822_v39 = vpack.c.bf16 %v1732_v34, %v1732_v34  ;;  %v4824_v40 = vpop.f32.mrb[20].mxu1 }
 0x569   : > { %v5666_v41 = vadd.f32 %v4824_v40, %v4462_v35  ;;  %v1802_v42 = vpop.f32.mrb[21].mxu1  ;;  %4827 = vmatpush3.bf16.xpose.msra.mxu0 %v1829_v38  ;;  %v1967_v56 = vsel %vm1164_vm3, %v1824_v52, 0 }
 0x56a   : > { %v1875_v45 = vsel %vm1164_vm3, %v1822_v39, 0  ;;  %v4825_v46 = vpop.f32.mrb[22].mxu1  ;;  %4838 = vmatprep.subr.bf16.mxu0 %v5302_v6  ;;  %v1803_v33 = vadd.f32 %v4462_v35, %v1802_v42 }
 0x56b   : > { %v5670_v47 = vadd.f32 %v4825_v46, %v4462_v35  ;;  %v1805_v48 = vpop.f32.mrb[23].mxu1  ;;  %4833 = vmatpush3.bf16.xpose.msra.mxu1 %v1875_v45 }
 0x56c   : > { %4844 = vmatprep.subr.bf16.mxu1 %v5302_v6  ;;  %v1806_v57 = vadd.f32 %v4462_v35, %v1805_v48  ;;  %v2061_v59 = vpack.c.bf16 %v1803_v33, %v1803_v33 }
 0x56e   : > { %v2062_v61 = vpack.c.bf16 %v1806_v57, %v1806_v57  ;;  %v2069_v0 = vsel %vm1410_vm4, %v2061_v59, 0 }
 0x570   : > { %4829 = vmatmul.mubr.msk.bf16.vlgmr.msra.gmra.mrb[32].mxu0 %vm1164_vm3, %v1817_v51  ;;  %v2115_v3 = vsel %vm1410_vm4, %v2062_v61, 0 }
 0x571   : > { %4839 = vmatpush3.bf16.xpose.msra.mxu0 %v1921_v54  ;;  %4840 = vmatprep.mubr.msk.bf16.mxu0 %vm5303_vm2, %v5302_v6 }
 0x572   : > { %4835 = vmatmul.mubr.msk.bf16.vlgmr.msra.gmra.mrb[24].mxu1 %vm1164_vm3, %v1818_v28  ;;  %4850 = vmatprep.subr.bf16.mxu0 %v5302_v6 }
 0x573   : > { %4845 = vmatpush3.bf16.xpose.msra.mxu1 %v1967_v56  ;;  %4846 = vmatprep.mubr.msk.bf16.mxu1 %vm5303_vm2, %v5302_v6 }
 0x574   : > { %4856 = vmatprep.subr.bf16.mxu1 %v5302_v6 }
 0x578   : > { %4841 = vmatmul.mubr.msk.bf16.vlgmr.msra.gmra.mrb[36].mxu0 %vm1164_vm3, %v1819_v60 }
 0x579   : > { %4851 = vmatpush3.bf16.msra.mxu0 %v2069_v0  ;;  %4852 = vmatprep.mubr.msk.bf16.mxu0 %vm5303_vm2, %v5302_v6 }
 0x57a   : > { %4847 = vmatmul.mubr.msk.bf16.vlgmr.msra.gmra.mrb[28].mxu1 %vm1164_vm3, %v1820_v63  ;;  %4862 = vmatprep.subr.bf16.mxu0 %v5302_v6  ;;  %v2063_v63 = vpack.c.bf16 %v5666_v41, %v5666_v41 }
 0x57b   : > { %4857 = vmatpush3.bf16.msra.mxu1 %v2115_v3  ;;  %4858 = vmatprep.mubr.msk.bf16.mxu1 %vm5303_vm2, %v5302_v6 }
 0x57c   : > { %4868 = vmatprep.subr.bf16.mxu1 %v5302_v6 }
 0x643   : > { %v1865_v4 = vpop.f32.mrb[32].mxu0 }
 0x644   : > { %v2009_v8 = vsel %vm5592_vm5, %v1865_v4, -1e+30  ;;  %v4830_v9 = vpop.f32.mrb[33].mxu0  ;;  %v2064_v4 = vpack.c.bf16 %v5670_v47, %v5670_v47 }
 0x645   : > { %v1868_v10 = vpop.f32.mrb[34].mxu0  ;;  %v1911_v11 = vpop.f32.mrb[24].mxu1  ;;  %v2013_v13 = vsel %vm1164_vm3, %v2009_v8, -inf }
 0x646   : > { %v2010_v14 = vsel %vm5592_vm5, %v1911_v11, -1e+30  ;;  %v4836_v17 = vpop.f32.mrb[25].mxu1  ;;  %2014 = vmax.xlane.f32.xlu1 %v2013_v13  ;;  %v4831_v18 = vpop.f32.mrb[35].mxu0  ;;  %v2161_v10 = vsel %vm1410_vm4, %v2063_v63, 0  ;;  %v5140_v13 = vld [vmem:[%s5445_s15 + $0x20] sm:$0xff]  }
 0x647   : > { %v1914_v19 = vpop.f32.mrb[26].mxu1  ;;  %v2016_v20 = vsel %vm1164_vm3, %v2010_v14, -inf  ;;  %v2207_v41 = vsel %vm1410_vm4, %v2064_v4, 0 }
 0x648   : > { %2017 = vmax.xlane.f32.xlu0 %v2016_v20  ;;  %v4837_v21 = vpop.f32.mrb[27].mxu1 }
 0x649   : > { %v5141_v21 = vld [vmem:[%s5445_s15 + $0x28] sm:$0xff]  }
 0x64b   : > { %v1957_v22 = vpop.f32.mrb[36].mxu0 }
 0x64c   : > { %v2011_v23 = vsel %vm5592_vm5, %v1957_v22, -1e+30  ;;  %v4842_v24 = vpop.f32.mrb[37].mxu0  ;;  %v5142_v22 = vld [vmem:[%s5451_s22 + $0x20] sm:$0xff]  }
 0x64d   : > { %v1960_v25 = vpop.f32.mrb[38].mxu0  ;;  %v2003_v26 = vpop.f32.mrb[28].mxu1  ;;  %v2019_v27 = vsel %vm1164_vm3, %v2011_v23, -inf  ;;  %v4475_v24 = vld [vmem:[%s5481_s21 + $0x4] sm:$0xf] }
 0x64e   : > { %v2012_v29 = vsel %vm5592_vm5, %v2003_v26, -1e+30  ;;  %v4848_v30 = vpop.f32.mrb[29].mxu1  ;;  %2020 = vmax.xlane.f32.xlu1 %v2019_v27  ;;  %v4843_v31 = vpop.f32.mrb[39].mxu0  ;;  %v2260_v25 = vsel %vm1410_vm4, %v4475_v24, 0 }
 0x64f   : > { %v2006_v32 = vpop.f32.mrb[30].mxu1  ;;  %v2022_v34 = vsel %vm1164_vm3, %v2012_v29, -inf  ;;  %v1594_v26 = vld [vmem:[%s5481_s21] sm:$0xf] }
 0x650   : > { %2023 = vmax.xlane.f32.xlu0 %v2022_v34  ;;  %v4849_v35 = vpop.f32.mrb[31].mxu1 }
 0x6d3   : > { %v2015_v36 = vpop.xlane.xlu1 %2014 }
 0x6d4   : > { %v2025_v37 = vsub.f32 %v2009_v8, %v2015_v36 }
 0x6d5   : > { %v2018_v38 = vpop.xlane.xlu0 %2017 }
 0x6d6   : > { %v2029_v39 = vmul.f32 1.442695, %v2025_v37  ;;  %v2026_v40 = vsub.f32 %v2010_v14, %v2018_v38 }
 0x6d8   : > { %5186 = vpow2.f32 %v2029_v39  ;;  %v2031_v42 = vmul.f32 1.442695, %v2026_v40 }
 0x6da   : > { %5188 = vpow2.f32 %v2031_v42 }
 0x6db   : > { %v2021_v43 = vpop.xlane.xlu1 %2020 }
 0x6dc   : > { %v2027_v44 = vsub.f32 %v2011_v23, %v2021_v43  ;;  %v5143_v23 = vld [vmem:[%s5451_s22 + $0x28] sm:$0xff]  }
 0x6dd   : > { %v2024_v45 = vpop.xlane.xlu0 %2023 }
 0x6de   : > { %v2033_v46 = vmul.f32 1.442695, %v2027_v44  ;;  %v2028_v48 = vsub.f32 %v2012_v29, %v2024_v45 }
 0x6e0   : > { %5190 = vpow2.f32 %v2033_v46  ;;  %v2035_v49 = vmul.f32 1.442695, %v2028_v48  ;;  %v2318_v46 = vsel %vm1410_vm4, %v1594_v26, 0  ;;  %v5144_v48 = vld [vmem:[%s5466_s28 + $0x20] sm:$0xff]  }
 0x6e2   : > { %v5187_v50 = vpop.eup %5186  ;;  %5192 = vpow2.f32 %v2035_v49 }
 0x6e3   : > { %v2037_v51 = vsel %vm1164_vm3, %v5187_v50, 0.0 }
 0x6e4   : > { %v5189_v52 = vpop.eup %5188  ;;  %2038 = vadd.xlane.f32.xlu1 %v2037_v51 }
 0x6e5   : > { %v2040_v54 = vsel %vm1164_vm3, %v5189_v52, 0.0 }
 0x6e6   : > { %2041 = vadd.xlane.f32.xlu0 %v2040_v54 }
 0x6ea   : > { %v5191_v28 = vpop.eup %5190 }
 0x6eb   : > { %v2043_v33 = vsel %vm1164_vm3, %v5191_v28, 0.0 }
 0x6ec   : > { %v5193_v55 = vpop.eup %5192  ;;  %2044 = vadd.xlane.f32.xlu1 %v2043_v33  ;;  %v5145_v33 = vld [vmem:[%s5466_s28 + $0x28] sm:$0xff]  }
 0x6ed   : > { %v2046_v56 = vsel %vm1164_vm3, %v5193_v55, 0.0 }
 0x6ee   : > { %2047 = vadd.xlane.f32.xlu0 %v2046_v56 }
 0x771   : > { %v2039_v57 = vpop.xlane.xlu1 %2038 }
 0x772   : > { %5194 = vrcp.f32 %v2039_v57 }
 0x773   : > { %v2042_v58 = vpop.xlane.xlu0 %2041 }
 0x774   : > { %5196 = vrcp.f32 %v2042_v58 }
 0x779   : > { %v2045_v59 = vpop.xlane.xlu1 %2044 }
 0x77a   : > { %5198 = vrcp.f32 %v2045_v59 }
 0x77b   : > { %v2048_v60 = vpop.xlane.xlu0 %2047 }
 0x77c   : > { %v5195_v61 = vpop.eup %5194  ;;  %5200 = vrcp.f32 %v2048_v60  ;;  %v4485_v60 = vld [vmem:[%s6079_s5 + $0x2] ss:$0 sm:$0xff] }
 0x77d   : > { %v2053_v0 = vmul.f32 %v5195_v61, %v5187_v50 }
 0x77e   : > { %v5197_v3 = vpop.eup %5196 }
 0x77f   : > { %v2054_v8 = vmul.f32 %v5197_v3, %v5189_v52  ;;  %v2057_v9 = vpack.c.bf16 %v2053_v0, %v2053_v0 }
 0x781   : > { %4853 = vmatmul.mubr.msk.bf16.vlgmr.msra.gmra.mrb[40].mxu0 %vm1164_vm3, %v2057_v9  ;;  %v2058_v11 = vpack.c.bf16 %v2054_v8, %v2054_v8 }
 0x782   : > { %4863 = vmatpush3.bf16.msra.mxu0 %v2161_v10  ;;  %4864 = vmatprep.mubr.msk.bf16.mxu0 %vm5303_vm2, %v5302_v6 }
 0x783   : > { %4859 = vmatmul.mubr.msk.bf16.vlgmr.msra.gmra.mrb[32].mxu1 %vm1164_vm3, %v2058_v11  ;;  %5082 = vmatprep.subr.msk.bf16.mxu0 %vm1410_vm4, %v4475_v24 }
 0x784   : > { %v5199_v14 = vpop.eup %5198  ;;  %4869 = vmatpush3.bf16.msra.mxu1 %v2207_v41  ;;  %4870 = vmatprep.mubr.msk.bf16.mxu1 %vm5303_vm2, %v5302_v6 }
 0x785   : > { %v2055_v47 = vmul.f32 %v5199_v14, %v5191_v28  ;;  %4886 = vmatprep.subr.bf16.mxu1 %v5140_v13 }
 0x786   : > { %v5201_v17 = vpop.eup %5200 }
 0x787   : > { %v2056_v18 = vmul.f32 %v5201_v17, %v5193_v55  ;;  %v2059_v19 = vpack.c.bf16 %v2055_v47, %v2055_v47  ;;  %v4495_v55 = vld [vmem:[%s5461_s27 + $0x2] ss:$0 sm:$0xff] }
 0x789   : > { %4865 = vmatmul.mubr.msk.bf16.vlgmr.msra.gmra.mrb[44].mxu0 %vm1164_vm3, %v2059_v19  ;;  %v2060_v20 = vpack.c.bf16 %v2056_v18, %v2056_v18  ;;  %v4505_v18 = vld [vmem:[%s5471_s1 + $0x2] ss:$0 sm:$0xff] }
 0x78a   : > { %4875 = vmatpush3.bf16.msra.mxu0 %v2260_v25 }
 0x78b   : > { %4871 = vmatmul.mubr.msk.bf16.vlgmr.msra.gmra.mrb[36].mxu1 %vm1164_vm3, %v2060_v20  ;;  %5083 = vmatprep.subr.msk.bf16.mxu0 %vm1410_vm4, %v1594_v26 }
 0x78c   : > { %4887 = vmatpush3.bf16.msra.mxu1 %v5140_v13  ;;  %4890 = vmatprep.mubr.msk.bf16.mxu1 %vm856_vm1, %v5536_v62 }
 0x78d   : > { %4888 = vmatprep.subr.bf16.mxu1 %v5141_v21 }
 0x790   : > { %4889 = vmatpush3.bf16.msra.mxu1 %v5141_v21 }
 0x791   : > { %4894 = vmatprep.subr.bf16.mxu1 %v5142_v22 }
 0x793   : > { %4891 = vmatmul.mubr.msk.bf16.vlgmr.msra.gmra.mrb[40].mxu1 %vm856_vm1, %v5540_v2 }
 0x794   : > { %4895 = vmatpush3.bf16.msra.mxu1 %v5142_v22  ;;  %4898 = vmatprep.mubr.msk.bf16.mxu1 %vm856_vm1, %v5536_v62 }
 0x795   : > { %4896 = vmatprep.subr.bf16.mxu1 %v5143_v23 }
 0x798   : > { %4897 = vmatpush3.bf16.msra.mxu1 %v5143_v23 }
 0x799   : > { %4910 = vmatprep.subr.bf16.mxu1 %v5302_v6 }
 0x79b   : > { %4899 = vmatmul.mubr.msk.bf16.vlgmr.msra.gmra.mrb[44].mxu1 %vm856_vm1, %v5540_v2 }
 0x79c   : > { %4912 = vmatprep.mubr.msk.bf16.mxu1 %vm5303_vm2, %v5302_v6 }
 0x854   : > { %v2105_v27 = vpop.f32.mrb[40].mxu0 }
 0x855   : > { %v4854_v29 = vpop.f32.mrb[41].mxu0 }
 0x856   : > { %v2108_v30 = vpop.f32.mrb[42].mxu0  ;;  %v2151_v31 = vpop.f32.mrb[32].mxu1 }
 0x857   : > { %v2249_v32 = vpack.c.bf16 %v2151_v31, %v2105_v27  ;;  %v4855_v34 = vpop.f32.mrb[43].mxu0  ;;  %v4860_v35 = vpop.f32.mrb[33].mxu1 }
 0x858   : > { %v2154_v36 = vpop.f32.mrb[34].mxu1 }
 0x859   : > { %v4861_v37 = vpop.f32.mrb[35].mxu1  ;;  %4876 = vmatprep.mubr.msk.bf16.mxu0 %vm1164_vm3, %v2249_v32 }
 0x85c   : > { %v2197_v38 = vpop.f32.mrb[44].mxu0 }
 0x85d   : > { %v4866_v39 = vpop.f32.mrb[45].mxu0 }
 0x85e   : > { %v2200_v40 = vpop.f32.mrb[46].mxu0  ;;  %v2243_v42 = vpop.f32.mrb[36].mxu1 }
 0x85f   : > { %v2250_v43 = vpack.c.bf16 %v2243_v42, %v2197_v38  ;;  %v4867_v44 = vpop.f32.mrb[47].mxu0  ;;  %v4872_v45 = vpop.f32.mrb[37].mxu1 }
 0x860   : > { %v2246_v49 = vpop.f32.mrb[38].mxu1 }
 0x861   : > { %v4873_v50 = vpop.f32.mrb[39].mxu1  ;;  %4877 = vmatmul.mubr.msk.bf16.vlgmr.msra.gmra.mrb[48].mxu0 %vm1164_vm3, %v2250_v43 }
 0x862   : > { %4882 = vmatprep.mubr.msk.bf16.mxu0 %vm1164_vm3, %v1592_v7  ;;  %4881 = vmatpush3.bf16.msra.mxu0 %v2318_v46 }
 0x863   : > { %4902 = vmatprep.subr.bf16.mxu0 %v5144_v48 }
 0x866   : > { %v4892_v51 = vpop.f32.mrb[40].mxu1 }
 0x867   : > { %v2428_v52 = vpop.f32.mrb[41].mxu1  ;;  %v2437_v10 = vadd.f32 %v4892_v51, %v4485_v60 }
 0x868   : > { %v4893_v54 = vpop.f32.mrb[42].mxu1 }
 0x869   : > { %v2431_v28 = vpop.f32.mrb[43].mxu1  ;;  %v2593_v41 = vpack.c.bf16 %v2437_v10, %v2437_v10  ;;  %v2440_v47 = vadd.f32 %v4893_v54, %v4485_v60 }
 0x86a   : > { %v2432_v8 = vadd.f32 %v4485_v60, %v2431_v28 }
 0x86b   : > { %v2594_v17 = vpack.c.bf16 %v2440_v47, %v2440_v47 }
 0x86c   : > { %v2592_v13 = vpack.c.bf16 %v2432_v8, %v2432_v8 }
 0x86d   : > { %4883 = vmatmul.mubr.msk.bf16.vlgmr.msra.gmra.mrb[48].mxu0 %vm1164_vm3, %v1593_v16  ;;  %v2429_v16 = vadd.f32 %v4485_v60, %v2428_v52 }
 0x86e   : > { %4903 = vmatpush3.bf16.msra.mxu0 %v5144_v48  ;;  %v4900_v56 = vpop.f32.mrb[44].mxu1  ;;  %4906 = vmatprep.mubr.msk.bf16.mxu0 %vm856_vm1, %v5536_v62 }
 0x86f   : > { %v2502_v1 = vpop.f32.mrb[45].mxu1  ;;  %4904 = vmatprep.subr.bf16.mxu0 %v5145_v33  ;;  %v2511_v12 = vadd.f32 %v4900_v56, %v4495_v55  ;;  %v2591_v0 = vpack.c.bf16 %v2429_v16, %v2429_v16 }
 0x870   : > { %v2503_v5 = vadd.f32 %v4495_v55, %v2502_v1  ;;  %v4901_v7 = vpop.f32.mrb[46].mxu1 }
 0x871   : > { %v2505_v57 = vpop.f32.mrb[47].mxu1  ;;  %v2597_v63 = vpack.c.bf16 %v2511_v12, %v2511_v12  ;;  %v2514_v3 = vadd.f32 %v4901_v7, %v4495_v55 }
 0x872   : > { %v2595_v58 = vpack.c.bf16 %v2503_v5, %v2503_v5  ;;  %v2506_v59 = vadd.f32 %v4495_v55, %v2505_v57  ;;  %4905 = vmatpush3.bf16.msra.mxu0 %v5145_v33 }
 0x873   : > { %4916 = vmatprep.subr.bf16.mxu0 %v5302_v6  ;;  %v2695_v9 = vsel %vm1164_vm3, %v2597_v63, 0  ;;  %v2598_v11 = vpack.c.bf16 %v2514_v3, %v2514_v3 }
 0x874   : > { %v2603_v15 = vsel %vm1164_vm3, %v2595_v58, 0  ;;  %v2596_v61 = vpack.c.bf16 %v2506_v59, %v2506_v59 }
 0x875   : > { %4907 = vmatmul.mubr.msk.bf16.vlgmr.msra.gmra.mrb[52].mxu0 %vm856_vm1, %v5540_v2  ;;  %4911 = vmatpush3.bf16.xpose.msra.mxu1 %v2603_v15  ;;  %v2741_v14 = vsel %vm1164_vm3, %v2598_v11, 0 }
 0x876   : > { %4922 = vmatprep.subr.bf16.mxu1 %v5302_v6  ;;  %4918 = vmatprep.mubr.msk.bf16.mxu0 %vm5303_vm2, %v5302_v6  ;;  %v2649_v4 = vsel %vm1164_vm3, %v2596_v61, 0 }
 0x87b   : > { %4917 = vmatpush3.bf16.xpose.msra.mxu0 %v2649_v4 }
 0x87c   : > { %4913 = vmatmul.mubr.msk.bf16.vlgmr.msra.gmra.mrb[48].mxu1 %vm1164_vm3, %v2591_v0  ;;  %4928 = vmatprep.subr.bf16.mxu0 %v5302_v6 }
 0x87d   : > { %4923 = vmatpush3.bf16.xpose.msra.mxu1 %v2695_v9  ;;  %4924 = vmatprep.mubr.msk.bf16.mxu1 %vm5303_vm2, %v5302_v6 }
 0x87e   : > { %4934 = vmatprep.subr.bf16.mxu1 %v5302_v6 }
 0x882   : > { %4919 = vmatmul.mubr.msk.bf16.vlgmr.msra.gmra.mrb[56].mxu0 %vm1164_vm3, %v2592_v13 }
 0x883   : > { %4929 = vmatpush3.bf16.xpose.msra.mxu0 %v2741_v14  ;;  %4930 = vmatprep.mubr.msk.bf16.mxu0 %vm5303_vm2, %v5302_v6 }
 0x884   : > { %4925 = vmatmul.mubr.msk.bf16.vlgmr.msra.gmra.mrb[52].mxu1 %vm1164_vm3, %v2593_v41  ;;  %4940 = vmatprep.subr.bf16.mxu0 %v5302_v6 }
 0x885   : > { %4936 = vmatprep.mubr.msk.bf16.mxu1 %vm5303_vm2, %v5302_v6 }
 0x88a   : > { %4931 = vmatmul.mubr.msk.bf16.vlgmr.msra.gmra.mrb[60].mxu0 %vm1164_vm3, %v2594_v17 }
 0x88b   : > { %4942 = vmatprep.mubr.msk.bf16.mxu0 %vm5303_vm2, %v5302_v6 }
 0x948   : > { %v4908_v19 = vpop.f32.mrb[52].mxu0 }
 0x949   : > { %v5786_v20 = vadd.f32 %v4908_v19, %v4505_v18  ;;  %v2576_v21 = vpop.f32.mrb[53].mxu0 }
 0x94a   : > { %v2577_v22 = vadd.f32 %v4505_v18, %v2576_v21  ;;  %v4909_v23 = vpop.f32.mrb[54].mxu0 }
 0x94b   : > { %v5788_v24 = vadd.f32 %v4909_v23, %v4505_v18  ;;  %v2579_v25 = vpop.f32.mrb[55].mxu0  ;;  %v2837_v19 = vpack.c.bf16 %v5786_v20, %v5786_v20 }
 0x94c   : > { %v2835_v26 = vpack.c.bf16 %v2577_v22, %v2577_v22  ;;  %v2580_v27 = vadd.f32 %v4505_v18, %v2579_v25  ;;  %v5146_v25 = vld [vmem:[%s5445_s15 + $0x30] sm:$0xff]  }
 0x94e   : > { %v2843_v29 = vsel %vm1410_vm4, %v2835_v26, 0  ;;  %v2836_v30 = vpack.c.bf16 %v2580_v27, %v2580_v27  ;;  %v2935_v26 = vsel %vm1410_vm4, %v2837_v19, 0 }
 0x94f   : > { %v2639_v31 = vpop.f32.mrb[48].mxu1  ;;  %4935 = vmatpush3.bf16.msra.mxu1 %v2843_v29  ;;  %v2838_v29 = vpack.c.bf16 %v5788_v24, %v5788_v24 }
 0x950   : > { %v2889_v32 = vsel %vm1410_vm4, %v2836_v30, 0  ;;  %v2783_v34 = vsel %vm5592_vm5, %v2639_v31, -1e+30  ;;  %v4914_v35 = vpop.f32.mrb[49].mxu1  ;;  %4946 = vmatprep.subr.bf16.mxu1 %v5302_v6 }
 0x951   : > { %v2642_v36 = vpop.f32.mrb[50].mxu1  ;;  %4941 = vmatpush3.bf16.msra.mxu0 %v2889_v32  ;;  %v2787_v37 = vsel %vm1164_vm3, %v2783_v34, -inf }
 0x952   : > { %2788 = vmax.xlane.f32.xlu0 %v2787_v37  ;;  %v4915_v38 = vpop.f32.mrb[51].mxu1  ;;  %4952 = vmatprep.subr.bf16.mxu0 %v5302_v6  ;;  %v5147_v36 = vld [vmem:[%s5445_s15 + $0x38] sm:$0xff]  }
 0x953   : > { %v5148_v38 = vld [vmem:[%s5451_s22 + $0x30] sm:$0xff]  }
 0x955   : > { %v2685_v39 = vpop.f32.mrb[56].mxu0 }
 0x956   : > { %v2784_v40 = vsel %vm5592_vm5, %v2685_v39, -1e+30  ;;  %v4920_v42 = vpop.f32.mrb[57].mxu0 }
 0x957   : > { %v2688_v43 = vpop.f32.mrb[58].mxu0  ;;  %v2731_v44 = vpop.f32.mrb[52].mxu1  ;;  %v2790_v45 = vsel %vm1164_vm3, %v2784_v40, -inf  ;;  %v4518_v42 = vld [vmem:[%s5481_s21 + $0x8] sm:$0xf] }
 0x958   : > { %v2785_v46 = vsel %vm5592_vm5, %v2731_v44, -1e+30  ;;  %2791 = vmax.xlane.f32.xlu0 %v2790_v45  ;;  %v4921_v48 = vpop.f32.mrb[59].mxu0  ;;  %v4926_v49 = vpop.f32.mrb[53].mxu1  ;;  %v3034_v43 = vsel %vm1410_vm4, %v4518_v42, 0  ;;  %v5150_v44 = vld [vmem:[%s5466_s28 + $0x30] sm:$0xff]  }
 0x959   : > { %v2734_v50 = vpop.f32.mrb[54].mxu1  ;;  %v2793_v51 = vsel %vm1164_vm3, %v2785_v46, -inf }
 0x95a   : > { %v4927_v52 = vpop.f32.mrb[55].mxu1  ;;  %2794 = vmax.xlane.f32.xlu1 %v2793_v51 }
 0x95d   : > { %v2777_v54 = vpop.f32.mrb[60].mxu0 }
 0x95e   : > { %v2786_v28 = vsel %vm5592_vm5, %v2777_v54, -1e+30  ;;  %v4932_v33 = vpop.f32.mrb[61].mxu0 }
 0x95f   : > { %v2780_v55 = vpop.f32.mrb[62].mxu0  ;;  %v2796_v56 = vsel %vm1164_vm3, %v2786_v28, -inf }
 0x960   : > { %2797 = vmax.xlane.f32.xlu1 %v2796_v56  ;;  %v4933_v1 = vpop.f32.mrb[63].mxu0 }
 0x9df   : > { %v2789_v5 = vpop.xlane.xlu0 %2788 }
 0x9e0   : > { %v2799_v7 = vsub.f32 %v2783_v34, %v2789_v5  ;;  %v2981_v34 = vsel %vm1410_vm4, %v2838_v29, 0 }
 0x9e2   : > { %v2803_v57 = vmul.f32 1.442695, %v2799_v7 }
 0x9e4   : > { %5202 = vpow2.f32 %v2803_v57 }
 0x9e5   : > { %v2792_v58 = vpop.xlane.xlu0 %2791 }
 0x9e6   : > { %v2800_v59 = vsub.f32 %v2784_v40, %v2792_v58  ;;  %v5149_v40 = vld [vmem:[%s5451_s22 + $0x38] sm:$0xff]  }
 0x9e7   : > { %v2795_v60 = vpop.xlane.xlu1 %2794  ;;  %v5151_v58 = vld [vmem:[%s5466_s28 + $0x38] sm:$0xff]  }
 0x9e8   : > { %v2805_v12 = vmul.f32 1.442695, %v2800_v59  ;;  %v2801_v15 = vsub.f32 %v2785_v46, %v2795_v60 }
 0x9ea   : > { %5204 = vpow2.f32 %v2805_v12  ;;  %v2807_v16 = vmul.f32 1.442695, %v2801_v15 }
 0x9ec   : > { %5206 = vpow2.f32 %v2807_v16 }
 0x9ed   : > { %v2798_v61 = vpop.xlane.xlu1 %2797 }
 0x9ee   : > { %v5203_v63 = vpop.eup %5202  ;;  %v2802_v0 = vsub.f32 %v2786_v28, %v2798_v61 }
 0x9ef   : > { %v2811_v3 = vsel %vm1164_vm3, %v5203_v63, 0.0 }
 0x9f0   : > { %v2809_v4 = vmul.f32 1.442695, %v2802_v0  ;;  %2812 = vadd.xlane.f32.xlu0 %v2811_v3 }
 0x9f2   : > { %5208 = vpow2.f32 %v2809_v4 }
 0x9f4   : > { %v5205_v8 = vpop.eup %5204 }
 0x9f5   : > { %v2814_v9 = vsel %vm1164_vm3, %v5205_v8, 0.0 }
 0x9f6   : > { %v5207_v10 = vpop.eup %5206  ;;  %2815 = vadd.xlane.f32.xlu0 %v2814_v9 }
 0x9f7   : > { %v2817_v11 = vsel %vm1164_vm3, %v5207_v10, 0.0 }
 0x9f8   : > { %2818 = vadd.xlane.f32.xlu1 %v2817_v11  ;;  %v4526_v11 = vld [vmem:[%s6079_s5 + $0x3] ss:$0 sm:$0xff] }
 0x9fc   : > { %v5209_v13 = vpop.eup %5208 }
 0x9fd   : > { %v2820_v41 = vsel %vm1164_vm3, %v5209_v13, 0.0 }
 0x9fe   : > { %2821 = vadd.xlane.f32.xlu1 %v2820_v41 }
 0xa7d   : > { %v2813_v14 = vpop.xlane.xlu0 %2812 }
 0xa7e   : > { %5210 = vrcp.f32 %v2813_v14 }
 0xa83   : > { %v2816_v47 = vpop.xlane.xlu0 %2815 }
 0xa84   : > { %5212 = vrcp.f32 %v2816_v47 }
 0xa85   : > { %v2819_v17 = vpop.xlane.xlu1 %2818 }
 0xa86   : > { %5214 = vrcp.f32 %v2819_v17 }
 0xa88   : > { %v5211_v18 = vpop.eup %5210 }
 0xa89   : > { %v2827_v21 = vmul.f32 %v5211_v18, %v5203_v63  ;;  %v4536_v63 = vld [vmem:[%s5461_s27 + $0x3] ss:$0 sm:$0xff]  ;;  %s6082_s27 = sld [smem:[#allocation20_spill]] }
 0xa8b   : > { %v2822_v22 = vpop.xlane.xlu1 %2821  ;;  %v2831_v23 = vpack.c.bf16 %v2827_v21, %v2827_v21 }
 0xa8c   : > { %5216 = vrcp.f32 %v2822_v22 }
 0xa8d   : > { %4937 = vmatmul.mubr.msk.bf16.vlgmr.msra.gmra.mrb[56].mxu1 %vm1164_vm3, %v2831_v23 }
 0xa8e   : > { %v5213_v27 = vpop.eup %5212  ;;  %4947 = vmatpush3.bf16.msra.mxu1 %v2935_v26  ;;  %4948 = vmatprep.mubr.msk.bf16.mxu1 %vm5303_vm2, %v5302_v6 }
 0xa8f   : > { %v2828_v30 = vmul.f32 %v5213_v27, %v5205_v8  ;;  %4964 = vmatprep.subr.bf16.mxu1 %v5146_v25  ;;  %s6083_s28 = scalar_lea.vmem %s6082_s27, %s5428_s18 }
 0xa90   : > { %v5215_v20 = vpop.eup %5214 }
 0xa91   : > { %v2829_v31 = vmul.f32 %v5215_v20, %v5207_v10  ;;  %v2832_v32 = vpack.c.bf16 %v2828_v30, %v2828_v30 }
 0xa93   : > { %4943 = vmatmul.mubr.msk.bf16.vlgmr.msra.gmra.mrb[64].mxu0 %vm1164_vm3, %v2832_v32  ;;  %v2833_v35 = vpack.c.bf16 %v2829_v31, %v2829_v31  ;;  %v4546_v31 = vld [vmem:[%s5471_s1 + $0x3] ss:$0 sm:$0xff] }
 0xa94   : > { %4953 = vmatpush3.bf16.msra.mxu0 %v2981_v34  ;;  %4954 = vmatprep.mubr.msk.bf16.mxu0 %vm5303_vm2, %v5302_v6 }
 0xa95   : > { %4949 = vmatmul.mubr.msk.bf16.vlgmr.msra.gmra.mrb[60].mxu1 %vm1164_vm3, %v2833_v35  ;;  %5084 = vmatprep.subr.msk.bf16.mxu0 %vm1410_vm4, %v4518_v42 }
 0xa96   : > { %v5217_v24 = vpop.eup %5216  ;;  %4965 = vmatpush3.bf16.msra.mxu1 %v5146_v25  ;;  %4968 = vmatprep.mubr.msk.bf16.mxu1 %vm856_vm1, %v5536_v62 }
 0xa97   : > { %v2830_v37 = vmul.f32 %v5217_v24, %v5209_v13  ;;  %4966 = vmatprep.subr.bf16.mxu1 %v5147_v36 }
 0xa99   : > { %v2834_v39 = vpack.c.bf16 %v2830_v37, %v2830_v37 }
 0xa9a   : > { %4967 = vmatpush3.bf16.msra.mxu1 %v5147_v36 }
 0xa9b   : > { %4955 = vmatmul.mubr.msk.bf16.vlgmr.msra.gmra.mrb[68].mxu0 %vm1164_vm3, %v2834_v39  ;;  %4972 = vmatprep.subr.bf16.mxu1 %v5148_v38 }
 0xa9c   : > { %4959 = vmatpush3.bf16.msra.mxu0 %v3034_v43 }
 0xa9d   : > { %4969 = vmatmul.mubr.msk.bf16.vlgmr.msra.gmra.mrb[64].mxu1 %vm856_vm1, %v5540_v2  ;;  %4980 = vmatprep.subr.bf16.mxu0 %v5150_v44 }
 0xa9e   : > { %4973 = vmatpush3.bf16.msra.mxu1 %v5148_v38  ;;  %4976 = vmatprep.mubr.msk.bf16.mxu1 %vm856_vm1, %v5536_v62 }
 0xa9f   : > { %4974 = vmatprep.subr.bf16.mxu1 %v5149_v40 }
 0xaa2   : > { %4975 = vmatpush3.bf16.msra.mxu1 %v5149_v40 }
 0xaa3   : > { %4988 = vmatprep.subr.bf16.mxu1 %v5302_v6 }
 0xaa5   : > { %4977 = vmatmul.mubr.msk.bf16.vlgmr.msra.gmra.mrb[68].mxu1 %vm856_vm1, %v5540_v2 }
 0xaa6   : > { %4990 = vmatprep.mubr.msk.bf16.mxu1 %vm5303_vm2, %v5302_v6 }
 0xb60   : > { %v2879_v45 = vpop.f32.mrb[56].mxu1 }
 0xb61   : > { %v4938_v46 = vpop.f32.mrb[57].mxu1 }
 0xb62   : > { %v2882_v48 = vpop.f32.mrb[58].mxu1 }
 0xb63   : > { %v4939_v49 = vpop.f32.mrb[59].mxu1 }
 0xb66   : > { %v2925_v50 = vpop.f32.mrb[64].mxu0 }
 0xb67   : > { %v3023_v51 = vpack.c.bf16 %v2925_v50, %v2879_v45  ;;  %v4944_v52 = vpop.f32.mrb[65].mxu0 }
 0xb68   : > { %v2928_v54 = vpop.f32.mrb[66].mxu0  ;;  %v2971_v28 = vpop.f32.mrb[60].mxu1 }
 0xb69   : > { %v4945_v33 = vpop.f32.mrb[67].mxu0  ;;  %4960 = vmatprep.mubr.msk.bf16.mxu0 %vm1164_vm3, %v3023_v51  ;;  %v4950_v55 = vpop.f32.mrb[61].mxu1 }
 0xb6a   : > { %v2974_v56 = vpop.f32.mrb[62].mxu1 }
 0xb6b   : > { %v4951_v1 = vpop.f32.mrb[63].mxu1 }
 0xb6e   : > { %v3017_v5 = vpop.f32.mrb[68].mxu0 }
 0xb6f   : > { %v3024_v7 = vpack.c.bf16 %v3017_v5, %v2971_v28  ;;  %v4956_v57 = vpop.f32.mrb[69].mxu0 }
 0xb70   : > { %v3020_v59 = vpop.f32.mrb[70].mxu0  ;;  %v4970_v60 = vpop.f32.mrb[64].mxu1 }
 0xb71   : > { %v4957_v12 = vpop.f32.mrb[71].mxu0  ;;  %4961 = vmatmul.mubr.msk.bf16.vlgmr.msra.gmra.mrb[48].mxu0 %vm1164_vm3, %v3024_v7  ;;  %v3148_v15 = vpop.f32.mrb[65].mxu1  ;;  %v3157_v26 = vadd.f32 %v4970_v60, %v4526_v11 }
 0xb72   : > { %4981 = vmatpush3.bf16.msra.mxu0 %v5150_v44  ;;  %4984 = vmatprep.mubr.msk.bf16.mxu0 %vm856_vm1, %v5536_v62  ;;  %v4971_v16 = vpop.f32.mrb[66].mxu1  ;;  %v3149_v47 = vadd.f32 %v4526_v11, %v3148_v15 }
 0xb73   : > { %v3151_v61 = vpop.f32.mrb[67].mxu1  ;;  %4982 = vmatprep.subr.bf16.mxu0 %v5151_v58  ;;  %v3160_v29 = vadd.f32 %v4971_v16, %v4526_v11  ;;  %v3313_v30 = vpack.c.bf16 %v3157_v26, %v3157_v26 }
 0xb74   : > { %v3311_v21 = vpack.c.bf16 %v3149_v47, %v3149_v47 }
 0xb75   : > { %v3314_v20 = vpack.c.bf16 %v3160_v29, %v3160_v29 }
 0xb76   : > { %4983 = vmatpush3.bf16.msra.mxu0 %v5151_v58 }
 0xb77   : > { %4994 = vmatprep.subr.bf16.mxu0 %v5302_v6 }
 0xb78   : > { %v4978_v0 = vpop.f32.mrb[68].mxu1 }
 0xb79   : > { %4985 = vmatmul.mubr.msk.bf16.vlgmr.msra.gmra.mrb[72].mxu0 %vm856_vm1, %v5540_v2  ;;  %v3222_v3 = vpop.f32.mrb[69].mxu1  ;;  %v3231_v13 = vadd.f32 %v4978_v0, %v4536_v63  ;;  %v3152_v2 = vadd.f32 %v4526_v11, %v3151_v61 }
 0xb7a   : > { %v3223_v4 = vadd.f32 %v4536_v63, %v3222_v3  ;;  %v4979_v8 = vpop.f32.mrb[70].mxu1  ;;  %4996 = vmatprep.mubr.msk.bf16.mxu0 %vm5303_vm2, %v5302_v6 }
 0xb7b   : > { %v3225_v9 = vpop.f32.mrb[71].mxu1  ;;  %v3234_v17 = vadd.f32 %v4979_v8, %v4536_v63  ;;  %v3317_v19 = vpack.c.bf16 %v3231_v13, %v3231_v13  ;;  %v3312_v23 = vpack.c.bf16 %v3152_v2, %v3152_v2 }
 0xb7c   : > { %v3315_v62 = vpack.c.bf16 %v3223_v4, %v3223_v4  ;;  %v3226_v10 = vadd.f32 %v4536_v63, %v3225_v9 }
 0xb7d   : > { %v3318_v22 = vpack.c.bf16 %v3234_v17, %v3234_v17  ;;  %v3415_v25 = vsel %vm1164_vm3, %v3317_v19, 0 }
 0xb7e   : > { %v3323_v41 = vsel %vm1164_vm3, %v3315_v62, 0  ;;  %v3316_v14 = vpack.c.bf16 %v3226_v10, %v3226_v10 }
 0xb7f   : > { %4989 = vmatpush3.bf16.xpose.msra.mxu1 %v3323_v41  ;;  %v3461_v27 = vsel %vm1164_vm3, %v3318_v22, 0 }
 0xb80   : > { %v3369_v18 = vsel %vm1164_vm3, %v3316_v14, 0  ;;  %5000 = vmatprep.subr.bf16.mxu1 %v5302_v6 }
 0xb81   : > { %4995 = vmatpush3.bf16.xpose.msra.mxu0 %v3369_v18 }
 0xb82   : > { %5006 = vmatprep.subr.bf16.mxu0 %v5302_v6 }
 0xb86   : > { %4991 = vmatmul.mubr.msk.bf16.vlgmr.msra.gmra.mrb[72].mxu1 %vm1164_vm3, %v3311_v21 }
 0xb87   : > { %5001 = vmatpush3.bf16.xpose.msra.mxu1 %v3415_v25  ;;  %5002 = vmatprep.mubr.msk.bf16.mxu1 %vm5303_vm2, %v5302_v6 }
 0xb88   : > { %4997 = vmatmul.mubr.msk.bf16.vlgmr.msra.gmra.mrb[76].mxu0 %vm1164_vm3, %v3312_v23  ;;  %5012 = vmatprep.subr.bf16.mxu1 %v5302_v6 }
 0xb89   : > { %5007 = vmatpush3.bf16.xpose.msra.mxu0 %v3461_v27  ;;  %5008 = vmatprep.mubr.msk.bf16.mxu0 %vm5303_vm2, %v5302_v6 }
 0xb8a   : > { %5018 = vmatprep.subr.bf16.mxu0 %v5302_v6 }
 0xb8e   : > { %5003 = vmatmul.mubr.msk.bf16.vlgmr.msra.gmra.mrb[76].mxu1 %vm1164_vm3, %v3313_v30 }
 0xb8f   : > { %5014 = vmatprep.mubr.msk.bf16.mxu1 %vm5303_vm2, %v5302_v6 }
 0xb90   : > { %5009 = vmatmul.mubr.msk.bf16.vlgmr.msra.gmra.mrb[80].mxu0 %vm1164_vm3, %v3314_v20 }
 0xb91   : > { %5020 = vmatprep.mubr.msk.bf16.mxu0 %vm5303_vm2, %v5302_v6 }
 0xc4c   : > { %v4986_v32 = vpop.f32.mrb[72].mxu0 }
 0xc4d   : > { %v5876_v34 = vadd.f32 %v4986_v32, %v4546_v31  ;;  %v3296_v35 = vpop.f32.mrb[73].mxu0 }
 0xc4e   : > { %v3297_v36 = vadd.f32 %v4546_v31, %v3296_v35  ;;  %v4987_v24 = vpop.f32.mrb[74].mxu0 }
 0xc4f   : > { %v5878_v37 = vadd.f32 %v4987_v24, %v4546_v31  ;;  %v3299_v38 = vpop.f32.mrb[75].mxu0  ;;  %v3557_v20 = vpack.c.bf16 %v5876_v34, %v5876_v34 }
 0xc50   : > { %v3555_v39 = vpack.c.bf16 %v3297_v36, %v3297_v36  ;;  %v3300_v40 = vadd.f32 %v4546_v31, %v3299_v38 }
 0xc51   : > { %v3558_v35 = vpack.c.bf16 %v5878_v37, %v5878_v37  ;;  %v3655_v38 = vsel %vm1410_vm4, %v3557_v20, 0 }
 0xc52   : > { %v3563_v42 = vsel %vm1410_vm4, %v3555_v39, 0  ;;  %v3556_v43 = vpack.c.bf16 %v3300_v40, %v3300_v40 }
 0xc53   : > { %5013 = vmatpush3.bf16.msra.mxu1 %v3563_v42  ;;  %v3701_v40 = vsel %vm1410_vm4, %v3558_v35, 0 }
 0xc54   : > { %v3609_v44 = vsel %vm1410_vm4, %v3556_v43, 0  ;;  %5024 = vmatprep.subr.bf16.mxu1 %v5302_v6 }
 0xc55   : > { %5019 = vmatpush3.bf16.msra.mxu0 %v3609_v44 }
 0xc56   : > { %5030 = vmatprep.subr.bf16.mxu0 %v5302_v6 }
 0xc59   : > { %v3359_v45 = vpop.f32.mrb[72].mxu1 }
 0xc5a   : > { %v3503_v46 = vsel %vm5592_vm5, %v3359_v45, -1e+30  ;;  %v4992_v48 = vpop.f32.mrb[73].mxu1 }
 0xc5b   : > { %v3362_v49 = vpop.f32.mrb[74].mxu1  ;;  %v3405_v50 = vpop.f32.mrb[76].mxu0  ;;  %v3507_v51 = vsel %vm1164_vm3, %v3503_v46, -inf }
 0xc5c   : > { %v3504_v52 = vsel %vm5592_vm5, %v3405_v50, -1e+30  ;;  %v4998_v54 = vpop.f32.mrb[77].mxu0  ;;  %3508 = vmax.xlane.f32.xlu0 %v3507_v51  ;;  %v4993_v28 = vpop.f32.mrb[75].mxu1 }
 0xc5d   : > { %v3408_v33 = vpop.f32.mrb[78].mxu0  ;;  %v3510_v55 = vsel %vm1164_vm3, %v3504_v52, -inf }
 0xc5e   : > { %3511 = vmax.xlane.f32.xlu1 %v3510_v55  ;;  %v4999_v56 = vpop.f32.mrb[79].mxu0 }
 0xc61   : > { %v3451_v1 = vpop.f32.mrb[76].mxu1 }
 0xc62   : > { %v3505_v5 = vsel %vm5592_vm5, %v3451_v1, -1e+30  ;;  %v5004_v7 = vpop.f32.mrb[77].mxu1 }
 0xc63   : > { %v3454_v57 = vpop.f32.mrb[78].mxu1  ;;  %v3497_v58 = vpop.f32.mrb[80].mxu0  ;;  %v3513_v59 = vsel %vm1164_vm3, %v3505_v5, -inf }
 0xc64   : > { %v3506_v60 = vsel %vm5592_vm5, %v3497_v58, -1e+30  ;;  %v5010_v12 = vpop.f32.mrb[81].mxu0  ;;  %3514 = vmax.xlane.f32.xlu0 %v3513_v59  ;;  %v5005_v15 = vpop.f32.mrb[79].mxu1 }
 0xc65   : > { %v3500_v16 = vpop.f32.mrb[82].mxu0  ;;  %v3516_v61 = vsel %vm1164_vm3, %v3506_v60, -inf }
 0xc66   : > { %3517 = vmax.xlane.f32.xlu1 %v3516_v61  ;;  %v5011_v63 = vpop.f32.mrb[83].mxu0  ;;  %v4562_v16 = vld [vmem:[%s6083_s28] ss:$0 sm:$0xff] }
 0xc67   : > { %v5258_v63 = vld [vmem:[#allocation2 + $0x10] sm:$0xff] }
 0xce9   : > { %v3509_v0 = vpop.xlane.xlu0 %3508 }
 0xcea   : > { %v3519_v3 = vsub.f32 %v3503_v46, %v3509_v0  ;;  %v4559_v46 = vld [vmem:[%s5481_s21 + $0xc] sm:$0xf]  ;;  %s6084_s21 = sld [smem:[#allocation21_spill]] }
 0xceb   : > { %v3512_v4 = vpop.xlane.xlu1 %3511  ;;  %v3754_v48 = vsel %vm1410_vm4, %v4559_v46, 0 }
 0xcec   : > { %v3523_v8 = vmul.f32 1.442695, %v3519_v3  ;;  %v3520_v9 = vsub.f32 %v3504_v52, %v3512_v4  ;;  %v5259_v3 = vld [vmem:[#allocation2] sm:$0xff] }
 0xcee   : > { %5218 = vpow2.f32 %v3523_v8  ;;  %v3525_v62 = vmul.f32 1.442695, %v3520_v9 }
 0xcf0   : > { %5220 = vpow2.f32 %v3525_v62  ;;  %s6085_s23 = scalar_lea.vmem %s6084_s21, %s5428_s18 }
 0xcf1   : > { %v3515_v10 = vpop.xlane.xlu0 %3514 }
 0xcf2   : > { %v3521_v11 = vsub.f32 %v3505_v5, %v3515_v10  ;;  %v5260_v10 = vld [vmem:[#allocation2 + $0x18] sm:$0xff] }
 0xcf3   : > { %v3518_v53 = vpop.xlane.xlu1 %3517 }
 0xcf4   : > { %v3527_v13 = vmul.f32 1.442695, %v3521_v11  ;;  %v3522_v41 = vsub.f32 %v3506_v60, %v3518_v53  ;;  %v5261_v53 = vld [vmem:[#allocation2 + $0x8] sm:$0xff] }
 0xcf6   : > { %5222 = vpow2.f32 %v3527_v13  ;;  %v3529_v14 = vmul.f32 1.442695, %v3522_v41 }
 0xcf8   : > { %v5219_v47 = vpop.eup %5218  ;;  %5224 = vpow2.f32 %v3529_v14 }
 0xcf9   : > { %v3531_v17 = vsel %vm1164_vm3, %v5219_v47, 0.0 }
 0xcfa   : > { %v5221_v18 = vpop.eup %5220  ;;  %3532 = vadd.xlane.f32.xlu0 %v3531_v17 }
 0xcfb   : > { %v3534_v2 = vsel %vm1164_vm3, %v5221_v18, 0.0 }
 0xcfc   : > { %3535 = vadd.xlane.f32.xlu1 %v3534_v2 }
 0xd00   : > { %v5223_v19 = vpop.eup %5222 }
 0xd01   : > { %v3537_v21 = vsel %vm1164_vm3, %v5223_v19, 0.0 }
 0xd02   : > { %v5225_v22 = vpop.eup %5224  ;;  %3538 = vadd.xlane.f32.xlu0 %v3537_v21 }
 0xd03   : > { %v3540_v23 = vsel %vm1164_vm3, %v5225_v22, 0.0 }
 0xd04   : > { %3541 = vadd.xlane.f32.xlu1 %v3540_v23 }
 0xd87   : > { %v3533_v25 = vpop.xlane.xlu0 %3532 }
 0xd88   : > { %5226 = vrcp.f32 %v3533_v25 }
 0xd89   : > { %v3536_v26 = vpop.xlane.xlu1 %3535 }
 0xd8a   : > { %5228 = vrcp.f32 %v3536_v26 }
 0xd8f   : > { %v3539_v27 = vpop.xlane.xlu0 %3538 }
 0xd90   : > { %5230 = vrcp.f32 %v3539_v27 }
 0xd91   : > { %v3542_v29 = vpop.xlane.xlu1 %3541 }
 0xd92   : > { %v5227_v30 = vpop.eup %5226  ;;  %5232 = vrcp.f32 %v3542_v29 }
 0xd93   : > { %v3547_v31 = vmul.f32 %v5227_v30, %v5219_v47 }
 0xd94   : > { %v5229_v32 = vpop.eup %5228 }
 0xd95   : > { %v3548_v36 = vmul.f32 %v5229_v32, %v5221_v18  ;;  %v3551_v24 = vpack.c.bf16 %v3547_v31, %v3547_v31 }
 0xd97   : > { %5015 = vmatmul.mubr.msk.bf16.vlgmr.msra.gmra.mrb[80].mxu1 %vm1164_vm3, %v3551_v24  ;;  %v3552_v39 = vpack.c.bf16 %v3548_v36, %v3548_v36 }
 0xd98   : > { %5025 = vmatpush3.bf16.msra.mxu1 %v3655_v38  ;;  %5026 = vmatprep.mubr.msk.bf16.mxu1 %vm5303_vm2, %v5302_v6 }
 0xd99   : > { %5021 = vmatmul.mubr.msk.bf16.vlgmr.msra.gmra.mrb[84].mxu0 %vm1164_vm3, %v3552_v39 }
 0xd9a   : > { %v5231_v34 = vpop.eup %5230  ;;  %5031 = vmatpush3.bf16.msra.mxu0 %v3701_v40  ;;  %5032 = vmatprep.mubr.msk.bf16.mxu0 %vm5303_vm2, %v5302_v6 }
 0xd9b   : > { %v3549_v37 = vmul.f32 %v5231_v34, %v5223_v19  ;;  %5085 = vmatprep.subr.msk.bf16.mxu0 %vm1410_vm4, %v4559_v46 }
 0xd9c   : > { %v5233_v42 = vpop.eup %5232 }
 0xd9d   : > { %v3550_v43 = vmul.f32 %v5233_v42, %v5225_v22  ;;  %v3553_v44 = vpack.c.bf16 %v3549_v37, %v3549_v37 }
 0xd9f   : > { %5027 = vmatmul.mubr.msk.bf16.vlgmr.msra.gmra.mrb[84].mxu1 %vm1164_vm3, %v3553_v44  ;;  %v3554_v45 = vpack.c.bf16 %v3550_v43, %v3550_v43  ;;  %v5152_v43 = vld [vmem:[%s5494_s8] sm:$0xff]   ;;  %v5153_v44 = vld [vmem:[%s5494_s8 + $0x8] sm:$0xff]  }
 0xda0   : > { %5042 = vmatprep.subr.bf16.mxu1 %v5152_v43 }
 0xda1   : > { %5033 = vmatmul.mubr.msk.bf16.vlgmr.msra.gmra.mrb[88].mxu0 %vm1164_vm3, %v3554_v45  ;;  %5043 = vmatpush3.bf16.msra.mxu1 %v5152_v43 }
 0xda2   : > { %5037 = vmatpush3.bf16.msra.mxu0 %v3754_v48  ;;  %5044 = vmatprep.subr.bf16.mxu1 %v5153_v44 }
 0xda5   : > { %5045 = vmatpush3.bf16.msra.mxu1 %v5153_v44 }
 0xe6a   : > { %v3599_v49 = vpop.f32.mrb[80].mxu1 }
 0xe6b   : > { %v5016_v50 = vpop.f32.mrb[81].mxu1 }
 0xe6c   : > { %v3602_v51 = vpop.f32.mrb[82].mxu1  ;;  %v3645_v52 = vpop.f32.mrb[84].mxu0 }
 0xe6d   : > { %v3743_v6 = vpack.c.bf16 %v3645_v52, %v3599_v49  ;;  %v5017_v54 = vpop.f32.mrb[83].mxu1  ;;  %v5022_v28 = vpop.f32.mrb[85].mxu0 }
 0xe6e   : > { %v3648_v33 = vpop.f32.mrb[86].mxu0 }
 0xe6f   : > { %v5023_v55 = vpop.f32.mrb[87].mxu0  ;;  %5038 = vmatprep.mubr.msk.bf16.mxu0 %vm1164_vm3, %v3743_v6 }
 0xe72   : > { %v3691_v56 = vpop.f32.mrb[84].mxu1 }
 0xe73   : > { %v5028_v1 = vpop.f32.mrb[85].mxu1 }
 0xe74   : > { %v3694_v5 = vpop.f32.mrb[86].mxu1  ;;  %v3737_v7 = vpop.f32.mrb[88].mxu0  ;;  %v4563_v1 = vld [vmem:[%s6085_s23] ss:$0 sm:$0xff] }
 0xe75   : > { %v3744_v57 = vpack.c.bf16 %v3737_v7, %v3691_v56  ;;  %v5029_v58 = vpop.f32.mrb[87].mxu1  ;;  %v5034_v59 = vpop.f32.mrb[89].mxu0 }
 0xe76   : > { %v3740_v60 = vpop.f32.mrb[90].mxu0 }
 0xe77   : > { %v5035_v12 = vpop.f32.mrb[91].mxu0  ;;  %5039 = vmatmul.mubr.msk.bf16.vlgmr.msra.gmra.mrb[48].mxu0 %vm1164_vm3, %v3744_v57  ;;  %v4564_v60 = vld [vmem:[%s6087_s26] ss:$0 sm:$0xff] }
 0xf4a   : > { %v5040_v15 = vpop.f32.mrb[48].mxu0 }
 0xf4b   : > { %v3790_v61 = vpop.f32.mrb[49].mxu0  ;;  %v3811_v0 = vadd.f32 %v5258_v63, %v5040_v15 }
 0xf4c   : > { %v3809_v4 = vadd.f32 %v5259_v3, %v3790_v61  ;;  %v5041_v8 = vpop.f32.mrb[50].mxu0 }
 0xf4d   : > { %v3793_v9 = vpop.f32.mrb[51].mxu0  ;;  %v3812_v11 = vadd.f32 %v5260_v10, %v5041_v8  ;;  %v5926_v41 = vadd.f32 %v4562_v16, %v3811_v0 }
 0xf4e   : > { %v5924_v62 = vadd.f32 %v4562_v16, %v3809_v4  ;;  %v3810_v13 = vadd.f32 %v5261_v53, %v3793_v9  ;;  %v5154_v53 = vld [vmem:[%s5503_s10] sm:$0xff]  }
 0xf4f   : > { %v5932_v17 = vadd.f32 %v4562_v16, %v3812_v11  ;;  %v3830_v2 = vsel %vm856_vm1, %v5926_v41, 0.0  ;;  %5050 = vmatprep.subr.bf16.mxu1 %v5154_v53 }
 0xf50   : > { %v5928_v14 = vadd.f32 %v4562_v16, %v3810_v13  ;;  %v3824_v47 = vsel %vm856_vm1, %v5924_v62, 0.0  ;;  %v5155_v13 = vld [vmem:[%s5503_s10 + $0x8] sm:$0xff]  }
 0xf51   : > { %3825 = vadd.xlane.f32.xlu0 %v3824_v47  ;;  %v3833_v19 = vsel %vm856_vm1, %v5932_v17, 0.0  ;;  %v5156_v47 = vld [vmem:[%s5503_s10 + $0x10] sm:$0xff]  }
 0xf52   : > { %v3827_v18 = vsel %vm856_vm1, %v5928_v14, 0.0 }
 0xf53   : > { %3828 = vadd.xlane.f32.xlu1 %v3827_v18  ;;  %v5157_v18 = vld [vmem:[%s5503_s10 + $0x18] sm:$0xff]  }
 0xf55   : > { %3831 = vadd.xlane.f32.xlu0 %v3830_v2  ;;  %v5158_v2 = vld [vmem:[%s5503_s10 + $0x20] sm:$0xff]  }
 0xf57   : > { %3834 = vadd.xlane.f32.xlu1 %v3833_v19  ;;  %v5159_v19 = vld [vmem:[%s5503_s10 + $0x28] sm:$0xff]  }
 0xfde   : > { %v3826_v21 = vpop.xlane.xlu0 %3825 }
 0xfdf   : > { %v3836_v22 = vmul.f32 0.03125, %v3826_v21  ;;  %v5160_v21 = vld [vmem:[%s5503_s10 + $0x30] sm:$0xff]  }
 0xfe0   : > { %v3829_v23 = vpop.xlane.xlu1 %3828 }
 0xfe1   : > { %v3840_v25 = vsub.f32 %v5924_v62, %v3836_v22  ;;  %v3837_v26 = vmul.f32 0.03125, %v3829_v23  ;;  %v5161_v22 = vld [vmem:[%s5503_s10 + $0x38] sm:$0xff]   ;;  %v4565_v23 = vld [vmem:[%s818_s30] ss:$0 sm:$0xff] }
 0xfe2   : > { %v3832_v27 = vpop.xlane.xlu0 %3831 }
 0xfe3   : > { %v3841_v29 = vsub.f32 %v5928_v14, %v3837_v26  ;;  %v3838_v30 = vmul.f32 0.03125, %v3832_v27  ;;  %v3844_v20 = vmul.f32 %v3840_v25, %v3840_v25 }
 0xfe4   : > { %v3835_v31 = vpop.xlane.xlu1 %3834 }
 0xfe5   : > { %v3842_v32 = vsub.f32 %v5926_v41, %v3838_v30  ;;  %v3839_v35 = vmul.f32 0.03125, %v3835_v31  ;;  %v3848_v36 = vsel %vm856_vm1, %v3844_v20, 0.0  ;;  %v3845_v24 = vmul.f32 %v3841_v29, %v3841_v29 }
 0xfe6   : > { %3849 = vadd.xlane.f32.xlu0 %v3848_v36 }
 0xfe7   : > { %v3843_v38 = vsub.f32 %v5932_v17, %v3839_v35  ;;  %v3851_v39 = vsel %vm856_vm1, %v3845_v24, 0.0  ;;  %v3846_v40 = vmul.f32 %v3842_v32, %v3842_v32 }
 0xfe8   : > { %3852 = vadd.xlane.f32.xlu1 %v3851_v39 }
 0xfe9   : > { %v3854_v34 = vsel %vm856_vm1, %v3846_v40, 0.0  ;;  %v3847_v37 = vmul.f32 %v3843_v38, %v3843_v38 }
 0xfea   : > { %3855 = vadd.xlane.f32.xlu0 %v3854_v34 }
 0xfeb   : > { %v3857_v42 = vsel %vm856_vm1, %v3847_v37, 0.0 }
 0xfec   : > { %3858 = vadd.xlane.f32.xlu1 %v3857_v42 }
0x1073   : > { %v3850_v45 = vpop.xlane.xlu0 %3849 }
0x1074   : > { %v3860_v46 = vmul.f32 0.03125, %v3850_v45 }
0x1075   : > { %v3853_v48 = vpop.xlane.xlu1 %3852 }
0x1076   : > { %v3864_v49 = vadd.f32 1e-05, %v3860_v46  ;;  %v3861_v50 = vmul.f32 0.03125, %v3853_v48 }
0x1077   : > { %v3856_v51 = vpop.xlane.xlu0 %3855 }
0x1078   : > { %5234 = vrsqrt.f32 %v3864_v49  ;;  %v3865_v52 = vadd.f32 1e-05, %v3861_v50  ;;  %v3862_v6 = vmul.f32 0.03125, %v3856_v51 }
0x1079   : > { %v3859_v54 = vpop.xlane.xlu1 %3858 }
0x107a   : > { %5236 = vrsqrt.f32 %v3865_v52  ;;  %v3866_v28 = vadd.f32 1e-05, %v3862_v6  ;;  %v3863_v33 = vmul.f32 0.03125, %v3859_v54 }
0x107c   : > { %5238 = vrsqrt.f32 %v3866_v28  ;;  %v3867_v55 = vadd.f32 1e-05, %v3863_v33 }
0x107e   : > { %5240 = vrsqrt.f32 %v3867_v55 }
0x1082   : > { %v5235_v56 = vpop.eup %5234 }
0x1083   : > { %v3872_v5 = vmul.f32 %v5235_v56, %v3840_v25 }
0x1084   : > { %v5237_v7 = vpop.eup %5236 }
0x1085   : > { %v3873_v57 = vmul.f32 %v5237_v7, %v3841_v29  ;;  %v3883_v58 = vmul.f32 %v4563_v1, %v3872_v5  ;;  %v4574_v7 = vld [vmem:[%s826_s11] ss:$0 sm:$0xff]  ;;  %s6089_s11 = sld [smem:[#allocation3_spill]] }
0x1086   : > { %v5239_v59 = vpop.eup %5238 }
0x1087   : > { %v3874_v12 = vmul.f32 %v5239_v59, %v3842_v32  ;;  %v3884_v15 = vmul.f32 %v4563_v1, %v3873_v57  ;;  %v3894_v0 = vadd.f32 %v4564_v60, %v3883_v58 }
0x1088   : > { %v5241_v16 = vpop.eup %5240 }
0x1089   : > { %v3885_v61 = vmul.f32 %v4563_v1, %v3874_v12  ;;  %v3875_v63 = vmul.f32 %v5241_v16, %v3843_v38  ;;  %v3895_v3 = vadd.f32 %v4564_v60, %v3884_v15 }
0x108b   : > { %v3886_v4 = vmul.f32 %v4563_v1, %v3875_v63  ;;  %v3898_v8 = vpack.c.bf16 %v3895_v3, %v3894_v0  ;;  %v3896_v9 = vadd.f32 %v4564_v60, %v3885_v61  ;;  %p4583_p8 = scmp.ne.s32.totalorder %s6089_s11, 1 }
0x108d   : > { %5046 = vmatprep.mubr.msk.bf16.mxu1 %vm856_vm1, %v3898_v8  ;;  %v3897_v10 = vadd.f32 %v4564_v60, %v3886_v4 }
0x108f   : > { %v3899_v11 = vpack.c.bf16 %v3897_v10, %v3896_v9 }
0x1091   : > { %5047 = vmatmul.mubr.msk.bf16.vlgmr.msra.gmra.mrb[88].mxu1 %vm856_vm1, %v3899_v11 }
0x1092   : > { %5051 = vmatpush3.bf16.msra.mxu1 %v5154_v53 }
0x1093   : > { %5052 = vmatprep.subr.bf16.mxu1 %v5155_v13 }
0x1096   : > { %5053 = vmatpush3.bf16.msra.mxu1 %v5155_v13 }
0x1097   : > { %5054 = vmatprep.subr.bf16.mxu1 %v5156_v47 }
0x109a   : > { %5055 = vmatpush3.bf16.msra.mxu1 %v5156_v47 }
0x109b   : > { %5056 = vmatprep.subr.bf16.mxu1 %v5157_v18 }
0x109e   : > { %5057 = vmatpush3.bf16.msra.mxu1 %v5157_v18 }
0x109f   : > { %5058 = vmatprep.subr.bf16.mxu1 %v5158_v2 }
0x10a2   : > { %5059 = vmatpush3.bf16.msra.mxu1 %v5158_v2 }
0x10a3   : > { %5060 = vmatprep.subr.bf16.mxu1 %v5159_v19 }
0x10a6   : > { %5061 = vmatpush3.bf16.msra.mxu1 %v5159_v19 }
0x10a7   : > { %5062 = vmatprep.subr.bf16.mxu1 %v5160_v21 }
0x10aa   : > { %5063 = vmatpush3.bf16.msra.mxu1 %v5160_v21 }
0x10ab   : > { %5064 = vmatprep.subr.bf16.mxu1 %v5161_v22 }
0x10ae   : > { %5065 = vmatpush3.bf16.msra.mxu1 %v5161_v22 }
0x1164   : > { %v5048_v25 = vpop.f32.mrb[88].mxu1 }
0x1165   : > { %v3972_v26 = vadd.f32 %v5048_v25, %v4565_v23  ;;  %v3963_v27 = vpop.f32.mrb[89].mxu1 }
0x1166   : > { %v3964_v29 = vadd.f32 %v4565_v23, %v3963_v27  ;;  %v5049_v30 = vpop.f32.mrb[90].mxu1 }
0x1167   : > { %v4572_v20 = vmul.f32 -1.702, %v3972_v26  ;;  %v3975_v31 = vadd.f32 %v5049_v30, %v4565_v23  ;;  %v3966_v32 = vpop.f32.mrb[91].mxu1 }
0x1168   : > { %v4570_v35 = vmul.f32 -1.702, %v3964_v29  ;;  %v3967_v36 = vadd.f32 %v4565_v23, %v3966_v32 }
0x1169   : > { %v3990_v24 = vmul.f32 1.442695, %v4572_v20  ;;  %v4573_v38 = vmul.f32 -1.702, %v3975_v31 }
0x116a   : > { %v3986_v39 = vmul.f32 1.442695, %v4570_v35  ;;  %v4571_v40 = vmul.f32 -1.702, %v3967_v36 }
0x116b   : > { %5242 = vpow2.f32 %v3990_v24  ;;  %v3992_v34 = vmul.f32 1.442695, %v4573_v38 }
0x116c   : > { %5244 = vpow2.f32 %v3986_v39  ;;  %v3988_v37 = vmul.f32 1.442695, %v4571_v40 }
0x116d   : > { %5246 = vpow2.f32 %v3992_v34 }
0x116e   : > { %5248 = vpow2.f32 %v3988_v37 }
0x1175   : > { %v5243_v42 = vpop.eup %5242 }
0x1176   : > { %v5245_v43 = vpop.eup %5244  ;;  %v3996_v44 = vadd.f32 1.0, %v5243_v42 }
0x1177   : > { %v5247_v45 = vpop.eup %5246  ;;  %v3994_v46 = vadd.f32 1.0, %v5245_v43 }
0x1178   : > { %v5249_v48 = vpop.eup %5248  ;;  %5250 = vrcp.f32 %v3996_v44  ;;  %v3997_v49 = vadd.f32 1.0, %v5247_v45 }
0x1179   : > { %5252 = vrcp.f32 %v3994_v46  ;;  %v3995_v50 = vadd.f32 1.0, %v5249_v48 }
0x117a   : > { %5254 = vrcp.f32 %v3997_v49 }
0x117b   : > { %5256 = vrcp.f32 %v3995_v50 }
0x1182   : > { %v5251_v51 = vpop.eup %5250 }
0x1183   : > { %v5253_v52 = vpop.eup %5252  ;;  %v4008_v28 = vmul.f32 %v5251_v51, %v3972_v26 }
0x1184   : > { %v5255_v6 = vpop.eup %5254  ;;  %v4006_v55 = vmul.f32 %v5253_v52, %v3964_v29 }
0x1185   : > { %v5257_v54 = vpop.eup %5256  ;;  %v4009_v33 = vmul.f32 %v5255_v6, %v3975_v31 }
0x1186   : > { %v4007_v56 = vmul.f32 %v5257_v54, %v3967_v36 }
0x1187   : > { %v4011_v1 = vpack.c.bf16 %v4009_v33, %v4008_v28 }
0x1188   : > { %v4010_v5 = vpack.c.bf16 %v4007_v56, %v4006_v55 }
0x118a   : > { %5066 = vmatprep.mubr.bf16.mxu1 %v4010_v5 }
0x118b   : > { %5067 = vmatmul.mubr.bf16.vlgmr.msra.gmra.mrb[92].mxu1 %v4011_v1 }
0x125e   : > { %v5068_v57 = vpop.f32.mrb[92].mxu1 }
0x125f   : > { %v4126_v58 = vadd.f32 %v5068_v57, %v4574_v7  ;;  %v4117_v59 = vpop.f32.mrb[93].mxu1 }
0x1260   : > { %v4118_v60 = vadd.f32 %v4574_v7, %v4117_v59  ;;  %v5069_v12 = vpop.f32.mrb[94].mxu1  ;;  %4143 = sbr.rel (%p4583_p8) target bundleno = 4711 (0x1267), region = 96 }
0x1261   : > { %v4134_v15 = vadd.f32 %v4126_v58, %v5926_v41  ;;  %v4129_v16 = vadd.f32 %v5069_v12, %v4574_v7  ;;  %v4120_v61 = vpop.f32.mrb[95].mxu1 }
0x1262   : > { %v4132_v63 = vadd.f32 %v4118_v60, %v5924_v62  ;;  %v4121_v0 = vadd.f32 %v4574_v7, %v4120_v61 }
0x1263   : > { %4138 = vst.msk [vmem:[#allocation2 + $0x10] sm:$0xff] %vm856_vm1, %v4134_v15  ;;  %v4135_v3 = vadd.f32 %v4129_v16, %v5932_v17  ;;  %4146 = vst.msk [vmem:[%s5512_s12 + $0x10] sm:$0xff] (!%p4583_p8), %vm856_vm1, %v4134_v15 }
0x1264   : > { %4136 = vst.msk [vmem:[#allocation2] sm:$0xff] %vm856_vm1, %v4132_v63  ;;  %v4133_v4 = vadd.f32 %v4121_v0, %v5928_v14  ;;  %4144 = vst.msk [vmem:[%s5512_s12] sm:$0xff] (!%p4583_p8), %vm856_vm1, %v4132_v63 }
0x1265   : > { %4139 = vst.msk [vmem:[#allocation2 + $0x18] sm:$0xff] %vm856_vm1, %v4135_v3  ;;  %4147 = vst.msk [vmem:[%s5512_s12 + $0x18] sm:$0xff] (!%p4583_p8), %vm856_vm1, %v4135_v3 }
0x1266   : > { %4137 = vst.msk [vmem:[#allocation2 + $0x8] sm:$0xff] %vm856_vm1, %v4133_v4  ;;  %4145 = vst.msk [vmem:[%s5512_s12 + $0x8] sm:$0xff] (!%p4583_p8), %vm856_vm1, %v4133_v4 }
0x1267 PF: > { %s6090_s18 = sld [smem:[#allocation6_spill]]  ;;  %s6091_s24 = sld [smem:[#allocation4_spill]] }
0x1268   : > { %s6092_s25 = sld [smem:[#allocation5_spill]]  ;;  %s6093_s26 = sld [smem:[#allocation7_spill]] }
0x1269   : > { %s6094_s27 = sld [smem:[#allocation8_spill]] }
0x126d   : > { %s27_s28 = sadd.s32 1, %s6090_s18  }
0x126e   : > { %p24_p9 = scmp.ge.s32.totalorder %s27_s28, 6  }
0x1270   :  { %26 = sbr.rel (!%p24_p9) target bundleno = 17 (0x11), region = 195 }

</bundles_post_ra>
